<compile_context>
chip_gen: v7x
topology: tpu7x:2x2x1
jax: 0.10.0
libtpu: 0.0.40
codegen_flags: <defaults>
</compile_context>

<pallas_src>
import jax
import jax.numpy as jnp
from jax.experimental import pallas as pl
from jax.experimental.pallas import tpu as pltpu


def _sigmoid(x):
    return 1.0 / (1.0 + jnp.exp(-x))


# -----------------------------------------------------------------------------
# Fused Gate kernel: one grid step == one batch element.
# -----------------------------------------------------------------------------
def _gate_kernel(x_ref, w1t_ref, b1_ref, w2_ref, b2_ref,
                 we1a_ref, we1m_ref, be1_ref, we2t_ref, be2_ref, o_ref):
    x = x_ref[0]                                                 # (HW, C) f32

    # --- spatial gate: 1x1 conv (+folded BN) -> SiLU -> 1x1 conv -> sigmoid
    h = jnp.dot(x, w1t_ref[...], preferred_element_type=jnp.float32) + b1_ref[...]
    h = h * _sigmoid(h)                                          # SiLU, (HW, C//4)
    s = jnp.sum(h * w2_ref[...], axis=1, keepdims=True) + b2_ref[...]
    s = _sigmoid(s)                                              # (HW, 1) spatial weights

    xg = x * s                                                   # (HW, C)

    # --- global avg / max pooling over the spatial axis
    inv_hw = 1.0 / x.shape[0]
    avg = jnp.sum(xg, axis=0, keepdims=True) * inv_hw            # (1, C)
    mx = jnp.max(xg, axis=0, keepdims=True)                      # (1, C)

    # --- expert gate MLP; cat([avg, max]) @ We1.T done as two half-matmuls
    g = (jnp.dot(avg, we1a_ref[...], preferred_element_type=jnp.float32)
         + jnp.dot(mx, we1m_ref[...], preferred_element_type=jnp.float32)
         + be1_ref[...])                                         # (1, C//2)
    g = g * _sigmoid(g)                                          # SiLU
    # TODO(synk): nn.Dropout(0.2) is identity in inference mode; train-mode
    # stochastic dropout (pltpu.prng_*) is intentionally not implemented.

    logits = (jnp.dot(g, we2t_ref[...], preferred_element_type=jnp.float32)
              + be2_ref[...])                                    # (1, E); temperature folded

    # --- softmax over experts (lane axis)
    m = jnp.max(logits, axis=1, keepdims=True)
    e = jnp.exp(logits - m)
    o_ref[0] = e / jnp.sum(e, axis=1, keepdims=True)


def _full_spec(shape):
    n = len(shape)
    return pl.BlockSpec(shape, lambda *_: (0,) * n)


def gate_forward(x, params, training=True):
    """x: (B, C, H, W) float32.  params: PyTorch-layout weights (see __main__)."""
    x = x.astype(jnp.float32)
    B, C, H, W = x.shape
    HW = H * W
    C4, C2 = C // 4, C // 2
    E = params["we2"].shape[0]
    eps = 1e-5

    # ---- fold BatchNorm (inference running stats) into the first 1x1 conv ----
    inv_std = params["bn_gamma"] / jnp.sqrt(params["bn_var"] + eps)          # (C4,)
    w1f = params["w1"] * inv_std[:, None]                                    # (C4, C)
    b1f = (params["b1"] - params["bn_mean"]) * inv_std + params["bn_beta"]   # (C4,)

    # ---- fold the temperature division (training path) into the last linear ----
    scale = (1.0 / params["temperature"][0]) if training else jnp.float32(1.0)
    we2f = params["we2"] * scale
    be2f = params["be2"] * scale

    # ---- kernel operand layouts (row-vector / lane-dense orientation) ----
    x_t = jnp.transpose(x.reshape(B, C, HW), (0, 2, 1))    # (B, HW, C)
    w1t = w1f.T                                            # (C, C4)
    b1r = b1f.reshape(1, C4)
    w2r = params["w2"].reshape(1, C4)
    b2r = params["b2"].reshape(1, 1)
    we1a = params["we1"][:, :C].T                          # (C, C2)  avg half
    we1m = params["we1"][:, C:].T                          # (C, C2)  max half
    be1r = params["be1"].reshape(1, C2)
    we2t = we2f.T                                          # (C2, E)
    be2r = be2f.reshape(1, E)

    out = pl.pallas_call(
        _gate_kernel,
        out_shape=jax.ShapeDtypeStruct((B, 1, E), jnp.float32),
        grid=(B,),
        in_specs=[
            pl.BlockSpec((1, HW, C), lambda b: (b, 0, 0)),   # per-batch image slab
            _full_spec((C, C4)),                             # conv1 (BN-folded), transposed
            _full_spec((1, C4)),                             # conv1 bias (BN-folded)
            _full_spec((1, C4)),                             # conv2 weight row
            _full_spec((1, 1)),                              # conv2 bias
            _full_spec((C, C2)),                             # expert fc1, avg half
            _full_spec((C, C2)),                             # expert fc1, max half
            _full_spec((1, C2)),                             # expert fc1 bias
            _full_spec((C2, E)),                             # expert fc2 (temp-folded)
            _full_spec((1, E)),                              # expert fc2 bias (temp-folded)
        ],
        out_specs=pl.BlockSpec((1, 1, E), lambda b: (b, 0, 0)),
        compiler_params=pltpu.CompilerParams(
            dimension_semantics=("parallel",)),
    )(x_t, w1t, b1r, w2r, b2r, we1a, we1m, be1r, we2t, be2r)
    return out.reshape(B, E)


# -----------------------------------------------------------------------------
# Pure-JAX reference (mirrors the PyTorch module, eval-mode BN / dropout)
# -----------------------------------------------------------------------------
def gate_reference(x, params, training=True):
    x = x.astype(jnp.float32)
    eps = 1e-5
    h = jnp.einsum("bchw,oc->bohw", x, params["w1"]) + params["b1"][None, :, None, None]
    h = ((h - params["bn_mean"][None, :, None, None])
         / jnp.sqrt(params["bn_var"][None, :, None, None] + eps)
         * params["bn_gamma"][None, :, None, None]
         + params["bn_beta"][None, :, None, None])
    h = h * jax.nn.sigmoid(h)
    s = jnp.einsum("bchw,oc->bohw", h, params["w2"]) + params["b2"][None, :, None, None]
    s = jax.nn.sigmoid(s)
    xg = x * s
    avg = jnp.mean(xg, axis=(2, 3))
    mx = jnp.max(xg, axis=(2, 3))
    comb = jnp.concatenate([avg, mx], axis=1)
    g = comb @ params["we1"].T + params["be1"]
    g = g * jax.nn.sigmoid(g)
    gates = g @ params["we2"].T + params["be2"]
    if training:
        gates = gates / params["temperature"][0]
    return jax.nn.softmax(gates, axis=1)


if __name__ == "__main__":
    B, C, H, W = 2, 16, 16, 16       # in_dim=16 (divisible by 4), 16x16 spatial
    E = 4                            # num_experts
    C4, C2 = C // 4, C // 2

    key = jax.random.PRNGKey(0)
    ks = jax.random.split(key, 13)
    params = {
        "w1": 0.2 * jax.random.normal(ks[0], (C4, C), jnp.float32),
        "b1": 0.1 * jax.random.normal(ks[1], (C4,), jnp.float32),
        "bn_gamma": 1.0 + 0.1 * jax.random.normal(ks[2], (C4,), jnp.float32),
        "bn_beta": 0.1 * jax.random.normal(ks[3], (C4,), jnp.float32),
        "bn_mean": 0.1 * jax.random.normal(ks[4], (C4,), jnp.float32),
        "bn_var": jnp.abs(1.0 + 0.1 * jax.random.normal(ks[5], (C4,), jnp.float32)),
        "w2": 0.3 * jax.random.normal(ks[6], (1, C4), jnp.float32),
        "b2": 0.1 * jax.random.normal(ks[7], (1,), jnp.float32),
        "we1": 0.1 * jax.random.normal(ks[8], (C2, 2 * C), jnp.float32),
        "be1": 0.1 * jax.random.normal(ks[9], (C2,), jnp.float32),
        "we2": 0.2 * jax.random.normal(ks[10], (E, C2), jnp.float32),
        "be2": 0.1 * jax.random.normal(ks[11], (E,), jnp.float32),
        "temperature": jnp.full((1,), 0.1, jnp.float32),
    }
    x = jax.random.normal(ks[12], (B, C, H, W), jnp.float32)

    fwd = jax.jit(lambda xx, pp: gate_forward(xx, pp, training=True))
    out = jax.block_until_ready(fwd(x, params))

    ref = gate_reference(x, params, training=True)
    assert out.shape == (B, E) and out.dtype == jnp.float32
    assert bool(jnp.allclose(jnp.sum(out, axis=1), 1.0, atol=1e-5))
    assert bool(jnp.allclose(out, ref, atol=1e-3, rtol=1e-3))
    print("KERNEL_OK")
</pallas_src>

<mosaic_0001>
module attributes {stable_mosaic.version = 11 : i64} {
  func.func @_gate_kernel(%arg0: i32, %arg1: memref<1x256x16xf32, #tpu.memory_space<vmem>>, %arg2: memref<16x4xf32, #tpu.memory_space<vmem>>, %arg3: memref<1x4xf32, #tpu.memory_space<vmem>>, %arg4: memref<1x4xf32, #tpu.memory_space<vmem>>, %arg5: memref<1x1xf32, #tpu.memory_space<vmem>>, %arg6: memref<16x8xf32, #tpu.memory_space<vmem>>, %arg7: memref<16x8xf32, #tpu.memory_space<vmem>>, %arg8: memref<1x8xf32, #tpu.memory_space<vmem>>, %arg9: memref<8x4xf32, #tpu.memory_space<vmem>>, %arg10: memref<1x4xf32, #tpu.memory_space<vmem>>, %arg11: memref<1x1x4xf32, #tpu.memory_space<vmem>>) attributes {dimension_semantics = [#tpu.dimension_semantics<parallel>], iteration_bounds = array<i64: 2>, scalar_prefetch = 0 : i64, scratch_operands = 0 : i64, tpu.core_type = #tpu.core_type<tc>, window_params = [{transform_indices = @transform_0, window_bounds = array<i64: 1, 256, 16>}, {pipeline_mode = #tpu.pipeline_mode<synchronous>, transform_indices = @transform_1, window_bounds = array<i64: 16, 4>}, {pipeline_mode = #tpu.pipeline_mode<synchronous>, transform_indices = @transform_2, window_bounds = array<i64: 1, 4>}, {pipeline_mode = #tpu.pipeline_mode<synchronous>, transform_indices = @transform_3, window_bounds = array<i64: 1, 4>}, {pipeline_mode = #tpu.pipeline_mode<synchronous>, transform_indices = @transform_4, window_bounds = array<i64: 1, 1>}, {pipeline_mode = #tpu.pipeline_mode<synchronous>, transform_indices = @transform_5, window_bounds = array<i64: 16, 8>}, {pipeline_mode = #tpu.pipeline_mode<synchronous>, transform_indices = @transform_6, window_bounds = array<i64: 16, 8>}, {pipeline_mode = #tpu.pipeline_mode<synchronous>, transform_indices = @transform_7, window_bounds = array<i64: 1, 8>}, {pipeline_mode = #tpu.pipeline_mode<synchronous>, transform_indices = @transform_8, window_bounds = array<i64: 8, 4>}, {pipeline_mode = #tpu.pipeline_mode<synchronous>, transform_indices = @transform_9, window_bounds = array<i64: 1, 4>}, {transform_indices = @transform_10, window_bounds = array<i64: 1, 1, 4>}]} {
    %c0 = arith.constant 0 : index
    %c0_0 = arith.constant 0 : index
    %c0_1 = arith.constant 0 : index
    %0 = vector.load %arg1[%c0, %c0_0, %c0_1] : memref<1x256x16xf32, #tpu.memory_space<vmem>>, vector<1x256x16xf32>
    %1 = vector.shape_cast %0 : vector<1x256x16xf32> to vector<256x16xf32>
    %c0_2 = arith.constant 0 : index
    %c0_3 = arith.constant 0 : index
    %2 = vector.load %arg2[%c0_2, %c0_3] : memref<16x4xf32, #tpu.memory_space<vmem>>, vector<16x4xf32>
    %cst = arith.constant dense<0.000000e+00> : vector<256x4xf32>
    %3 = tpu.matmul %1, %2, %cst {dimension_numbers = #tpu.dot_dimension_numbers<[1], [0], [0], [1], [0, 0, 1, 1], [], []>} : vector<256x16xf32>, vector<16x4xf32>, vector<256x4xf32> -> vector<256x4xf32>
    %c0_4 = arith.constant 0 : index
    %c0_5 = arith.constant 0 : index
    %4 = vector.load %arg3[%c0_4, %c0_5] : memref<1x4xf32, #tpu.memory_space<vmem>>, vector<1x4xf32>
    %5 = vector.broadcast %4 : vector<1x4xf32> to vector<256x4xf32>
    %6 = arith.addf %3, %5 : vector<256x4xf32>
    %cst_6 = arith.constant 0.000000e+00 : f32
    %7 = vector.broadcast %cst_6 : f32 to vector<256x4xf32>
    %8 = arith.subf %7, %6 : vector<256x4xf32>
    %9 = math.exp %8 : vector<256x4xf32>
    %cst_7 = arith.constant 1.000000e+00 : f32
    %10 = vector.broadcast %cst_7 : f32 to vector<256x4xf32>
    %11 = arith.addf %10, %9 : vector<256x4xf32>
    %cst_8 = arith.constant 1.000000e+00 : f32
    %12 = vector.broadcast %cst_8 : f32 to vector<256x4xf32>
    %13 = arith.divf %12, %11 : vector<256x4xf32>
    %14 = arith.mulf %6, %13 : vector<256x4xf32>
    %c0_9 = arith.constant 0 : index
    %c0_10 = arith.constant 0 : index
    %15 = vector.load %arg4[%c0_9, %c0_10] : memref<1x4xf32, #tpu.memory_space<vmem>>, vector<1x4xf32>
    %16 = vector.broadcast %15 : vector<1x4xf32> to vector<256x4xf32>
    %17 = arith.mulf %14, %16 : vector<256x4xf32>
    %cst_11 = arith.constant dense<0.000000e+00> : vector<256xf32>
    %18 = vector.multi_reduction <add>, %17, %cst_11 [1] : vector<256x4xf32> to vector<256xf32>
    %19 = vector.shape_cast %18 : vector<256xf32> to vector<256x1xf32>
    %c0_12 = arith.constant 0 : index
    %c0_13 = arith.constant 0 : index
    %20 = vector.load %arg5[%c0_12, %c0_13] : memref<1x1xf32, #tpu.memory_space<vmem>>, vector<1x1xf32>
    %21 = vector.broadcast %20 : vector<1x1xf32> to vector<256x1xf32>
    %22 = arith.addf %19, %21 : vector<256x1xf32>
    %cst_14 = arith.constant 0.000000e+00 : f32
    %23 = vector.broadcast %cst_14 : f32 to vector<256x1xf32>
    %24 = arith.subf %23, %22 : vector<256x1xf32>
    %25 = math.exp %24 : vector<256x1xf32>
    %cst_15 = arith.constant 1.000000e+00 : f32
    %26 = vector.broadcast %cst_15 : f32 to vector<256x1xf32>
    %27 = arith.addf %26, %25 : vector<256x1xf32>
    %cst_16 = arith.constant 1.000000e+00 : f32
    %28 = vector.broadcast %cst_16 : f32 to vector<256x1xf32>
    %29 = arith.divf %28, %27 : vector<256x1xf32>
    %30 = vector.broadcast %29 : vector<256x1xf32> to vector<256x16xf32>
    %31 = arith.mulf %1, %30 : vector<256x16xf32>
    %cst_17 = arith.constant dense<0.000000e+00> : vector<16xf32>
    %32 = vector.multi_reduction <add>, %31, %cst_17 [0] : vector<256x16xf32> to vector<16xf32>
    %33 = vector.shape_cast %32 : vector<16xf32> to vector<1x16xf32>
    %cst_18 = arith.constant 3.906250e-03 : f32
    %34 = vector.broadcast %cst_18 : f32 to vector<1x16xf32>
    %35 = arith.mulf %33, %34 : vector<1x16xf32>
    %cst_19 = arith.constant dense<0xFF800000> : vector<16xf32>
    %36 = vector.multi_reduction <maximumf>, %31, %cst_19 [0] : vector<256x16xf32> to vector<16xf32>
    %37 = vector.shape_cast %36 : vector<16xf32> to vector<1x16xf32>
    %c0_20 = arith.constant 0 : index
    %c0_21 = arith.constant 0 : index
    %38 = vector.load %arg6[%c0_20, %c0_21] : memref<16x8xf32, #tpu.memory_space<vmem>>, vector<16x8xf32>
    %cst_22 = arith.constant dense<0.000000e+00> : vector<1x8xf32>
    %39 = tpu.matmul %35, %38, %cst_22 {dimension_numbers = #tpu.dot_dimension_numbers<[1], [0], [0], [1], [0, 0, 1, 1], [], []>} : vector<1x16xf32>, vector<16x8xf32>, vector<1x8xf32> -> vector<1x8xf32>
    %c0_23 = arith.constant 0 : index
    %c0_24 = arith.constant 0 : index
    %40 = vector.load %arg7[%c0_23, %c0_24] : memref<16x8xf32, #tpu.memory_space<vmem>>, vector<16x8xf32>
    %cst_25 = arith.constant dense<0.000000e+00> : vector<1x8xf32>
    %41 = tpu.matmul %37, %40, %cst_25 {dimension_numbers = #tpu.dot_dimension_numbers<[1], [0], [0], [1], [0, 0, 1, 1], [], []>} : vector<1x16xf32>, vector<16x8xf32>, vector<1x8xf32> -> vector<1x8xf32>
    %42 = arith.addf %39, %41 : vector<1x8xf32>
    %c0_26 = arith.constant 0 : index
    %c0_27 = arith.constant 0 : index
    %43 = vector.load %arg8[%c0_26, %c0_27] : memref<1x8xf32, #tpu.memory_space<vmem>>, vector<1x8xf32>
    %44 = arith.addf %42, %43 : vector<1x8xf32>
    %cst_28 = arith.constant 0.000000e+00 : f32
    %45 = vector.broadcast %cst_28 : f32 to vector<1x8xf32>
    %46 = arith.subf %45, %44 : vector<1x8xf32>
    %47 = math.exp %46 : vector<1x8xf32>
    %cst_29 = arith.constant 1.000000e+00 : f32
    %48 = vector.broadcast %cst_29 : f32 to vector<1x8xf32>
    %49 = arith.addf %48, %47 : vector<1x8xf32>
    %cst_30 = arith.constant 1.000000e+00 : f32
    %50 = vector.broadcast %cst_30 : f32 to vector<1x8xf32>
    %51 = arith.divf %50, %49 : vector<1x8xf32>
    %52 = arith.mulf %44, %51 : vector<1x8xf32>
    %c0_31 = arith.constant 0 : index
    %c0_32 = arith.constant 0 : index
    %53 = vector.load %arg9[%c0_31, %c0_32] : memref<8x4xf32, #tpu.memory_space<vmem>>, vector<8x4xf32>
    %cst_33 = arith.constant dense<0.000000e+00> : vector<1x4xf32>
    %54 = tpu.matmul %52, %53, %cst_33 {dimension_numbers = #tpu.dot_dimension_numbers<[1], [0], [0], [1], [0, 0, 1, 1], [], []>} : vector<1x8xf32>, vector<8x4xf32>, vector<1x4xf32> -> vector<1x4xf32>
    %c0_34 = arith.constant 0 : index
    %c0_35 = arith.constant 0 : index
    %55 = vector.load %arg10[%c0_34, %c0_35] : memref<1x4xf32, #tpu.memory_space<vmem>>, vector<1x4xf32>
    %56 = arith.addf %54, %55 : vector<1x4xf32>
    %cst_36 = arith.constant dense<0xFF800000> : vector<1xf32>
    %57 = vector.multi_reduction <maximumf>, %56, %cst_36 [1] : vector<1x4xf32> to vector<1xf32>
    %58 = vector.shape_cast %57 : vector<1xf32> to vector<1x1xf32>
    %59 = vector.broadcast %58 : vector<1x1xf32> to vector<1x4xf32>
    %60 = arith.subf %56, %59 : vector<1x4xf32>
    %61 = math.exp %60 : vector<1x4xf32>
    %cst_37 = arith.constant dense<0.000000e+00> : vector<1xf32>
    %62 = vector.multi_reduction <add>, %61, %cst_37 [1] : vector<1x4xf32> to vector<1xf32>
    %63 = vector.shape_cast %62 : vector<1xf32> to vector<1x1xf32>
    %64 = vector.broadcast %63 : vector<1x1xf32> to vector<1x4xf32>
    %65 = arith.divf %61, %64 : vector<1x4xf32>
    %c0_38 = arith.constant 0 : index
    %c0_39 = arith.constant 0 : index
    %c0_40 = arith.constant 0 : index
    %66 = vector.load %arg11[%c0_38, %c0_39, %c0_40] : memref<1x1x4xf32, #tpu.memory_space<vmem>>, vector<1x1x4xf32>
    %67 = vector.shape_cast %66 : vector<1x1x4xf32> to vector<1x4xf32>
    %68 = vector.shape_cast %65 : vector<1x4xf32> to vector<1x1x4xf32>
    tpu.vector_store %arg11[%c0_38, %c0_39, %c0_40], %68 {strides = array<i32>} : memref<1x1x4xf32, #tpu.memory_space<vmem>>, vector<1x1x4xf32>,
    return
  }
  func.func @transform_0(%arg0: i32) -> (i32, i32, i32) {
    %c0_i32 = arith.constant 0 : i32
    %c0_i32_0 = arith.constant 0 : i32
    %c0_i32_1 = arith.constant 0 : i32
    return %arg0, %c0_i32, %c0_i32_0 : i32, i32, i32
  }
  func.func @transform_1(%arg0: i32) -> (i32, i32) {
    %c0_i32 = arith.constant 0 : i32
    %c0_i32_0 = arith.constant 0 : i32
    %c0_i32_1 = arith.constant 0 : i32
    return %c0_i32, %c0_i32_0 : i32, i32
  }
  func.func @transform_2(%arg0: i32) -> (i32, i32) {
    %c0_i32 = arith.constant 0 : i32
    %c0_i32_0 = arith.constant 0 : i32
    %c0_i32_1 = arith.constant 0 : i32
    return %c0_i32, %c0_i32_0 : i32, i32
  }
  func.func @transform_3(%arg0: i32) -> (i32, i32) {
    %c0_i32 = arith.constant 0 : i32
    %c0_i32_0 = arith.constant 0 : i32
    %c0_i32_1 = arith.constant 0 : i32
    return %c0_i32, %c0_i32_0 : i32, i32
  }
  func.func @transform_4(%arg0: i32) -> (i32, i32) {
    %c0_i32 = arith.constant 0 : i32
    %c0_i32_0 = arith.constant 0 : i32
    %c0_i32_1 = arith.constant 0 : i32
    return %c0_i32, %c0_i32_0 : i32, i32
  }
  func.func @transform_5(%arg0: i32) -> (i32, i32) {
    %c0_i32 = arith.constant 0 : i32
    %c0_i32_0 = arith.constant 0 : i32
    %c0_i32_1 = arith.constant 0 : i32
    return %c0_i32, %c0_i32_0 : i32, i32
  }
  func.func @transform_6(%arg0: i32) -> (i32, i32) {
    %c0_i32 = arith.constant 0 : i32
    %c0_i32_0 = arith.constant 0 : i32
    %c0_i32_1 = arith.constant 0 : i32
    return %c0_i32, %c0_i32_0 : i32, i32
  }
  func.func @transform_7(%arg0: i32) -> (i32, i32) {
    %c0_i32 = arith.constant 0 : i32
    %c0_i32_0 = arith.constant 0 : i32
    %c0_i32_1 = arith.constant 0 : i32
    return %c0_i32, %c0_i32_0 : i32, i32
  }
  func.func @transform_8(%arg0: i32) -> (i32, i32) {
    %c0_i32 = arith.constant 0 : i32
    %c0_i32_0 = arith.constant 0 : i32
    %c0_i32_1 = arith.constant 0 : i32
    return %c0_i32, %c0_i32_0 : i32, i32
  }
  func.func @transform_9(%arg0: i32) -> (i32, i32) {
    %c0_i32 = arith.constant 0 : i32
    %c0_i32_0 = arith.constant 0 : i32
    %c0_i32_1 = arith.constant 0 : i32
    return %c0_i32, %c0_i32_0 : i32, i32
  }
  func.func @transform_10(%arg0: i32) -> (i32, i32, i32) {
    %c0_i32 = arith.constant 0 : i32
    %c0_i32_0 = arith.constant 0 : i32
    %c0_i32_1 = arith.constant 0 : i32
    return %arg0, %c0_i32, %c0_i32_0 : i32, i32, i32
  }
}

</mosaic_0001>

<bundles_post_ra>
// kernel: _lambda_.1
= control target key start
LH: loop header
LB: loop body
LE: loop exit
PB: predicated region body
PF: predicated region fallthrough
CT: control target
= control target key end

     0   :  { %s3275_s0 = inlined_call_operand.vmem [shape: f32[2,256,16], index: 0, kind: input, shape index: {}]   ;;  %s3276_s1 = inlined_call_operand.vmem [shape: f32[16,4], index: 1, kind: input, shape index: {}]   ;;  %s3277_s2 = inlined_call_operand.vmem [shape: f32[1,4], index: 2, kind: input, shape index: {}]   ;;  %s3278_s3 = inlined_call_operand.vmem [shape: f32[1,4], index: 3, kind: input, shape index: {}]   ;;  %s3279_s4 = inlined_call_operand.<no memory space> [shape: f32[1,1], index: 4, kind: input, shape index: {}]   ;;  %s3280_s5 = inlined_call_operand.vmem [shape: f32[16,8], index: 5, kind: input, shape index: {}]   ;;  %s3281_s6 = inlined_call_operand.vmem [shape: f32[16,8], index: 6, kind: input, shape index: {}]   ;;  %s3282_s7 = inlined_call_operand.vmem [shape: f32[1,8], index: 7, kind: input, shape index: {}]   ;;  %s3283_s8 = inlined_call_operand.vmem [shape: f32[8,4], index: 8, kind: input, shape index: {}]   ;;  %s3284_s9 = inlined_call_operand.vmem [shape: f32[1,4], index: 9, kind: input, shape index: {}]   ;;  %s3285_s10 = inlined_call_operand.hbm [shape: f32[2,1,4], index: 10, kind: output, shape index: {}]  }
   0x1   :  { %v15_v0 = vstv %s3279_s4 }
   0x2   :  { %16 = vst [vmem:[#allocation2] sm:$0x1] %v15_v0 }
   0x3   :  { %17 = vsyncpa [#allocation4], 0 }
   0x4   :  { %19 = vsyncpa [#allocation4 + $0x1], 0  ;;  %s2601_s15 = smov 0   ;;  %s2603_s16 = smov 0  }
   0x5   :  { %s2605_s17 = smov 0   ;;  %s2607_s18 = smov 0  }
   0x6 LB: > { %s2622_s4 = sadd.s32 4294967295, %s2536_s18   ;;  %s1960_s19 = sadd.s32 4294967294, %s2536_s18   ;;  %s2536_s18 = sphi %s2607_s18, %s3291_s18   ;;  %s2532_s17 = sphi %s2605_s17, %s3290_s17   ;;  %s2528_s16 = sphi %s2603_s16, %s3289_s16   ;;  %s2524_s15 = sphi %s2601_s15, %s3288_s15  }
   0x7   : > { %s2626_s20 = sadd.s32 1, %s2536_s18   ;;  %s247_s21 = sadd.s32 1, %s2532_s17 }
   0x8   : > { %s244_s22 = ssub.s32 %s2536_s18, %s2626_s20  ;;  %p257_p0 = scmp.ne.s32.totalorder %s2532_s17, %s2528_s16 }
   0x9   : > { %p245_p1 = scmp.eq.s32.totalorder %s244_s22, 0  ;;  %p258_p2 = scmp.eq.s32.totalorder %s2622_s4, 1 }
   0xa   : > { %p263_p3 = scmp.ne.s32.totalorder %s2528_s16, %s2524_s15  ;;  %p264_p4 = scmp.eq.s32.totalorder %s1960_s19, 1 }
   0xb   : > { %s2637_s23 = scalar_select %p245_p1, %s2532_s17, %s247_s21  }
   0xc   : > { %p2639_p5 = por %p258_p2, %p257_p0  ;;  %p2643_p6 = por %p264_p4, %p263_p3 }
   0xd   : > { %p1963_p7 = scmp.ge.s32.totalorder %s2536_s18, 1  ;;  %p317_p8 = scmp.lt.s32.totalorder %s2536_s18, 3 }
   0xf   : > { %p318_p9 = pnand %p1963_p7, %p317_p8 }
  0x10   : > { %v391_v1 = vld [vmem:[%s3276_s1] sm:$0xff] (!%p318_p9)  ;;  %v392_v2 = vld [vmem:[%s3276_s1 + $0x8] sm:$0xff] (!%p318_p9)  ;;  %p354_p10 = scmp.lt.s32.totalorder (!%p318_p9), %s2622_s4, 1  ;;  %vm400_vm0 = vcmask (!%p318_p9), 130048   ;;  %vm985_vm1 = vcmask (!%p318_p9), 31744   ;;  %vm2540_vm2 = vmmov (!%p318_p9), 0  }
  0x11   : > { %321 = sbr.rel (%p318_p9) target bundleno = 1470 (0x5be), region = 60  ;;  %v2121_v3 = vpack.c.bf16 (!%p318_p9), %v392_v2, %v391_v1  ;;  %v2729_v36 = vld [vmem:[%s3277_s2] ss:$0 sm:$0xff] (!%p318_p9)  ;;  %vm1805_vm3 = vcmask (!%p318_p9), 64512   ;;  %vm1879_vm4 = vcmask (!%p318_p9), 24576   ;;  %s352_s29 = sand.u32 (!%p318_p9), 1, %s2528_s16  }
  0x12   : > { %s1893_s21 = scalar_lea.sflag (!%p318_p9), [#allocation4], %s352_s29 }
  0x13   : > { %2122 = vmatprep.subr.bf16.mxu0 (!%p318_p9), %v2121_v3  ;;  %2131 = vmatprep.subr.bf16.mxu1 (!%p318_p9), %v2121_v3 }
  0x14   : > { %2124 = vmatpush3.bf16.msra.mxu0 (!%p318_p9), %v2121_v3  ;;  %2132 = vmatpush3.bf16.msra.mxu1 (!%p318_p9), %v2121_v3 }
  0x18   : > { %s355_s30 = scalar_select %p354_p10, %s2622_s4, 1 }
  0x1a   : > { %s2007_s11 = sshll.u32 %s355_s30, 8  ;;  %s2004_s30 = sshll.u32 %s2622_s4, 4 }
  0x1b   : > { %s2660_s14 = scalar_lea.vmem %s3275_s0, %s2007_s11  ;;  %s353_s11 = scalar_lea.vmem [#allocation3], %s352_s29 }
  0x1c   : > { %v359_v4 = vld [vmem:[%s2660_s14] sm:$0xff]  ;;  %v360_v6 = vld [vmem:[%s2660_s14 + $0x8] sm:$0xff]  ;;  %v361_v8 = vld [vmem:[%s2660_s14 + $0x10] sm:$0xff]  ;;  %s1905_s12 = sshll.u32 %s353_s11, 4  ;;  %s3232_s19 = scalar_lea.hbm %s3285_s10, %s2004_s30  ;;  %s3234_s12 = int_to_ptr.vmem [resolvable:$true] %s1905_s12 }
  0x1d   : > { %v379_v5 = vld [vmem:[%s2660_s14 + $0xa0] sm:$0xff]  ;;  %2054 = vmatprep.mubr.msk.f32.mxu0 %vm400_vm0, %v359_v4  ;;  %v380_v7 = vld [vmem:[%s2660_s14 + $0xa8] sm:$0xff]  ;;  %v362_v9 = vld [vmem:[%s2660_s14 + $0x18] sm:$0xff]  ;;  %s2474_s22 = scalar_lea.vmem %s3234_s12, 16  ;;  %s2542_s4 = smov [#allocation3]  }
  0x1e   : > { %2084 = vmatprep.mubr.msk.f32.mxu1 %vm400_vm0, %v379_v5  ;;  %2055 = vmatmul.mubr.msk.f32.vlgmr.msra.gmra.mrb[0].mxu0 %vm400_vm0, %v360_v6  ;;  %v363_v10 = vld [vmem:[%s2660_s14 + $0x20] sm:$0xff]  ;;  %v381_v11 = vld [vmem:[%s2660_s14 + $0xb0] sm:$0xff]  ;;  %v382_v12 = vld [vmem:[%s2660_s14 + $0xb8] sm:$0xff]  ;;  %p2475_p11 = scmp.ne.s32.totalorder %s3234_s12, %s2474_s22  ;;  %s2478_s26 = sshll.u32 %s2542_s4, 4  ;;  %s2479_s26 = int_to_ptr.vmem [resolvable:$false] %s2478_s26 }
  0x1f   : > { %2085 = vmatmul.mubr.msk.f32.vlgmr.msra.gmra.mrb[0].mxu1 %vm400_vm0, %v380_v7  ;;  %2057 = vmatprep.mubr.msk.f32.mxu0 %vm400_vm0, %v361_v8  ;;  %v364_v13 = vld [vmem:[%s2660_s14 + $0x28] sm:$0xff]  ;;  %v383_v14 = vld [vmem:[%s2660_s14 + $0xc0] sm:$0xff]  ;;  %v365_v15 = vld [vmem:[%s2660_s14 + $0x30] sm:$0xff]  ;;  %s2480_s27 = scalar_lea.vmem %s2479_s26, 32  ;;  %p2481_p0 = scmp.lt.s32.totalorder %s3234_s12, %s2479_s26 }
  0x20   : > { %2087 = vmatprep.mubr.msk.f32.mxu1 %vm400_vm0, %v381_v11  ;;  %v384_v16 = vld [vmem:[%s2660_s14 + $0xc8] sm:$0xff]  ;;  %v385_v17 = vld [vmem:[%s2660_s14 + $0xd0] sm:$0xff]  ;;  %v366_v18 = vld [vmem:[%s2660_s14 + $0x38] sm:$0xff]  ;;  %p2476_p12 = pnand %p2475_p11, %p2639_p5  ;;  %p2482_p1 = scmp.lt.s32.totalorder %s2480_s27, %s2474_s22 }
  0x21   : > { %v367_v19 = vld [vmem:[%s2660_s14 + $0x40] sm:$0xff]  ;;  %v386_v20 = vld [vmem:[%s2660_s14 + $0xd8] sm:$0xff]  ;;  %v368_v22 = vld [vmem:[%s2660_s14 + $0x48] sm:$0xff] }
  0x22   : > { %2058 = vmatmul.mubr.msk.f32.gmra.mrb[2].mxu0 %vm400_vm0, %v362_v9  ;;  %v387_v21 = vld [vmem:[%s2660_s14 + $0xe0] sm:$0xff]  ;;  %v369_v23 = vld [vmem:[%s2660_s14 + $0x50] sm:$0xff]  ;;  %v388_v24 = vld [vmem:[%s2660_s14 + $0xe8] sm:$0xff]  ;;  %p2477_p13 = pneg %p2476_p12  ;;  %p2483_p2 = por %p2482_p1, %p2481_p0 }
  0x23   : > { %2060 = vmatprep.mubr.msk.f32.mxu0 %vm400_vm0, %v363_v10  ;;  %2088 = vmatmul.mubr.msk.f32.gmra.mrb[2].mxu1 %vm400_vm0, %v382_v12  ;;  %v389_v25 = vld [vmem:[%s2660_s14 + $0xf0] sm:$0xff]  ;;  %v370_v26 = vld [vmem:[%s2660_s14 + $0x58] sm:$0xff]  ;;  %v371_v27 = vld [vmem:[%s2660_s14 + $0x60] sm:$0xff] }
  0x24   : > { %2090 = vmatprep.mubr.msk.f32.mxu1 %vm400_vm0, %v383_v14  ;;  %v390_v28 = vld [vmem:[%s2660_s14 + $0xf8] sm:$0xff]  ;;  %v372_v29 = vld [vmem:[%s2660_s14 + $0x68] sm:$0xff]  ;;  %v373_v30 = vld [vmem:[%s2660_s14 + $0x70] sm:$0xff]  ;;  %p2484_p3 = pnand %p2483_p2, %p2477_p13 }
  0x25   : > { %v374_v31 = vld [vmem:[%s2660_s14 + $0x78] sm:$0xff]  ;;  %v375_v32 = vld [vmem:[%s2660_s14 + $0x80] sm:$0xff]  ;;  %v376_v33 = vld [vmem:[%s2660_s14 + $0x88] sm:$0xff] }
  0x26   : > { %2061 = vmatmul.mubr.msk.f32.gmra.mrb[4].mxu0 %vm400_vm0, %v364_v13  ;;  %v377_v34 = vld [vmem:[%s2660_s14 + $0x90] sm:$0xff]  ;;  %v378_v35 = vld [vmem:[%s2660_s14 + $0x98] sm:$0xff] }
  0x27   : > { %2063 = vmatprep.mubr.msk.f32.mxu0 %vm400_vm0, %v365_v15  ;;  %2091 = vmatmul.mubr.msk.f32.gmra.mrb[4].mxu1 %vm400_vm0, %v384_v16 }
  0x28   : > { %2093 = vmatprep.mubr.msk.f32.mxu1 %vm400_vm0, %v385_v17 }
  0x2a   : > { %2064 = vmatmul.mubr.msk.f32.gmra.mrb[6].mxu0 %vm400_vm0, %v366_v18 }
  0x2b   : > { %2066 = vmatprep.mubr.msk.f32.mxu0 %vm400_vm0, %v367_v19  ;;  %2094 = vmatmul.mubr.msk.f32.gmra.mrb[6].mxu1 %vm400_vm0, %v386_v20 }
  0x2c   : > { %2096 = vmatprep.mubr.msk.f32.mxu1 %vm400_vm0, %v387_v21 }
  0x2e   : > { %2067 = vmatmul.mubr.msk.f32.gmra.mrb[8].mxu0 %vm400_vm0, %v368_v22 }
  0x2f   : > { %2069 = vmatprep.mubr.msk.f32.mxu0 %vm400_vm0, %v369_v23  ;;  %2097 = vmatmul.mubr.msk.f32.gmra.mrb[8].mxu1 %vm400_vm0, %v388_v24 }
  0x30   : > { %2099 = vmatprep.mubr.msk.f32.mxu1 %vm400_vm0, %v389_v25 }
  0x32   : > { %2070 = vmatmul.mubr.msk.f32.gmra.mrb[10].mxu0 %vm400_vm0, %v370_v26 }
  0x33   : > { %2072 = vmatprep.mubr.msk.f32.mxu0 %vm400_vm0, %v371_v27  ;;  %2100 = vmatmul.mubr.msk.f32.gmra.mrb[10].mxu1 %vm400_vm0, %v390_v28 }
  0x36   : > { %2073 = vmatmul.mubr.msk.f32.gmra.mrb[12].mxu0 %vm400_vm0, %v372_v29 }
  0x37   : > { %2075 = vmatprep.mubr.msk.f32.mxu0 %vm400_vm0, %v373_v30 }
  0x3a   : > { %2076 = vmatmul.mubr.msk.f32.gmra.mrb[14].mxu0 %vm400_vm0, %v374_v31 }
  0x3b   : > { %2078 = vmatprep.mubr.msk.f32.mxu0 %vm400_vm0, %v375_v32 }
  0x3e   : > { %2079 = vmatmul.mubr.msk.f32.gmra.mrb[16].mxu0 %vm400_vm0, %v376_v33 }
  0x3f   : > { %2081 = vmatprep.mubr.msk.f32.mxu0 %vm400_vm0, %v377_v34 }
  0x42   : > { %2082 = vmatmul.mubr.msk.f32.gmra.mrb[18].mxu0 %vm400_vm0, %v378_v35 }
  0xf1   : > { %v2056_v37 = vpop.f32.mrb[0].mxu0 }
  0xf2   : > { %v2086_v38 = vpop.f32.mrb[0].mxu1  ;;  %v2732_v39 = vadd.f32 %v2056_v37, %v2729_v36  ;;  %v563_v41 = vpop.f32.mrb[1].mxu0 }
  0xf3   : > { %v2735_v40 = vadd.f32 %v2086_v38, %v2729_v36  ;;  %v663_v42 = vpop.f32.mrb[1].mxu1  ;;  %v2738_v43 = vadd.f32 %v2729_v36, %v563_v41 }
  0xf4   : > { %v2741_v44 = vadd.f32 %v2729_v36, %v663_v42  ;;  %v723_v45 = vsub.f32 0.0, %v2732_v39 }
  0xf5   : > { %v743_v46 = vsub.f32 0.0, %v2735_v40  ;;  %v722_v47 = vsub.f32 0.0, %v2738_v43  ;;  %v2059_v49 = vpop.f32.mrb[2].mxu0 }
  0xf6   : > { %v742_v48 = vsub.f32 0.0, %v2741_v44  ;;  %v756_v50 = vmul.f32 1.442695, %v723_v45  ;;  %v2748_v52 = vadd.f32 %v2059_v49, %v2729_v36  ;;  %v573_v53 = vpop.f32.mrb[3].mxu0  ;;  %v2089_v57 = vpop.f32.mrb[2].mxu1 }
  0xf7   : > { %v796_v51 = vmul.f32 1.442695, %v743_v46  ;;  %v754_v54 = vmul.f32 1.442695, %v722_v47  ;;  %v2751_v56 = vadd.f32 %v2729_v36, %v573_v53  ;;  %v2755_v59 = vadd.f32 %v2089_v57, %v2729_v36  ;;  %v673_v60 = vpop.f32.mrb[3].mxu1 }
  0xf8   : > { %v794_v55 = vmul.f32 1.442695, %v742_v48  ;;  %2178 = vpow2.f32 %v756_v50  ;;  %v725_v58 = vsub.f32 0.0, %v2748_v52  ;;  %v2759_v63 = vadd.f32 %v2729_v36, %v673_v60 }
  0xf9   : > { %2180 = vpow2.f32 %v796_v51  ;;  %v724_v61 = vsub.f32 0.0, %v2751_v56  ;;  %v2062_v62 = vpop.f32.mrb[4].mxu0  ;;  %v745_v3 = vsub.f32 0.0, %v2755_v59 }
  0xfa   : > { %2182 = vpow2.f32 %v754_v54  ;;  %v760_v0 = vmul.f32 1.442695, %v725_v58  ;;  %v2762_v1 = vadd.f32 %v2062_v62, %v2729_v36  ;;  %v583_v2 = vpop.f32.mrb[5].mxu0  ;;  %v744_v6 = vsub.f32 0.0, %v2759_v63  ;;  %v2092_v7 = vpop.f32.mrb[4].mxu1 }
  0xfb   : > { %2184 = vpow2.f32 %v794_v55  ;;  %v758_v4 = vmul.f32 1.442695, %v724_v61  ;;  %v2766_v5 = vadd.f32 %v2729_v36, %v583_v2  ;;  %v800_v9 = vmul.f32 1.442695, %v745_v3  ;;  %v2773_v11 = vpop.f32.mrb[5].mxu1 }
  0xfc   : > { %2186 = vpow2.f32 %v760_v0  ;;  %v727_v8 = vsub.f32 0.0, %v2762_v1  ;;  %v2771_v10 = vadd.f32 %v2092_v7, %v2729_v36  ;;  %v798_v17 = vmul.f32 1.442695, %v744_v6 }
  0xfd   : > { %2188 = vpow2.f32 %v758_v4  ;;  %v726_v12 = vsub.f32 0.0, %v2766_v5  ;;  %v2065_v13 = vpop.f32.mrb[6].mxu0 }
  0xfe   : > { %v764_v14 = vmul.f32 1.442695, %v727_v8  ;;  %v2777_v15 = vadd.f32 %v2065_v13, %v2729_v36  ;;  %v593_v16 = vpop.f32.mrb[7].mxu0  ;;  %v747_v18 = vsub.f32 0.0, %v2771_v10  ;;  %2190 = vpow2.f32 %v800_v9  ;;  %v2783_v21 = vpop.f32.mrb[6].mxu1 }
  0xff   : > { %v762_v19 = vmul.f32 1.442695, %v726_v12  ;;  %v2781_v20 = vadd.f32 %v2729_v36, %v593_v16  ;;  %v2786_v24 = vpop.f32.mrb[7].mxu1  ;;  %v2820_v9 = vadd.f32 %v2729_v36, %v2773_v11 }
 0x100   : > { %2192 = vpow2.f32 %v764_v14  ;;  %v729_v22 = vsub.f32 0.0, %v2777_v15  ;;  %v804_v23 = vmul.f32 1.442695, %v747_v18 }
 0x101   : > { %2194 = vpow2.f32 %v762_v19  ;;  %v2068_v25 = vpop.f32.mrb[8].mxu0  ;;  %v728_v28 = vsub.f32 0.0, %v2781_v20 }
 0x102   : > { %v2179_v26 = vpop.eup %2178  ;;  %v768_v27 = vmul.f32 1.442695, %v729_v22  ;;  %v2790_v29 = vadd.f32 %v2068_v25, %v2729_v36  ;;  %v603_v30 = vpop.f32.mrb[9].mxu0  ;;  %2196 = vpow2.f32 %v798_v17 }
 0x103   : > { %v2181_v31 = vpop.eup %2180  ;;  %v819_v32 = vadd.f32 1.0, %v2179_v26  ;;  %v2793_v33 = vadd.f32 %v2729_v36, %v603_v30  ;;  %2198 = vpow2.f32 %v804_v23  ;;  %v2795_v34 = vpop.f32.mrb[8].mxu1  ;;  %v766_v49 = vmul.f32 1.442695, %v728_v28 }
 0x104   : > { %v2183_v35 = vpop.eup %2182  ;;  %v839_v37 = vadd.f32 1.0, %v2181_v31  ;;  %2200 = vpow2.f32 %v768_v27  ;;  %v731_v38 = vsub.f32 0.0, %v2790_v29  ;;  %v2798_v41 = vpop.f32.mrb[9].mxu1  ;;  %v746_v31 = vsub.f32 0.0, %v2820_v9 }
 0x105   : > { %v2185_v42 = vpop.eup %2184  ;;  %2202 = vrcp.f32 %v819_v32  ;;  %v818_v45 = vadd.f32 1.0, %v2183_v35  ;;  %v2071_v46 = vpop.f32.mrb[10].mxu0  ;;  %v730_v55 = vsub.f32 0.0, %v2793_v33 }
 0x106   : > { %v2187_v47 = vpop.eup %2186  ;;  %2204 = vrcp.f32 %v839_v37  ;;  %v838_v48 = vadd.f32 1.0, %v2185_v42  ;;  %v2801_v50 = vadd.f32 %v2071_v46, %v2729_v36  ;;  %v613_v51 = vpop.f32.mrb[11].mxu0  ;;  %v772_v61 = vmul.f32 1.442695, %v731_v38 }
 0x107   : > { %v2189_v53 = vpop.eup %2188  ;;  %2206 = vrcp.f32 %v818_v45  ;;  %v821_v54 = vadd.f32 1.0, %v2187_v47  ;;  %v2805_v57 = vadd.f32 %v2729_v36, %v613_v51  ;;  %v2807_v58 = vpop.f32.mrb[10].mxu1  ;;  %v770_v14 = vmul.f32 1.442695, %v730_v55  ;;  %v2849_v55 = vld [vmem:[%s3278_s3] ss:$0 sm:$0xff] }
 0x108   : > { %2208 = vrcp.f32 %v838_v48  ;;  %v820_v60 = vadd.f32 1.0, %v2189_v53  ;;  %v733_v62 = vsub.f32 0.0, %v2801_v50  ;;  %v2810_v0 = vpop.f32.mrb[11].mxu1  ;;  %v2812_v2 = vpop.eup %2190  ;;  %v2841_v47 = vadd.f32 %v2783_v21, %v2729_v36 }
 0x109   : > { %2210 = vrcp.f32 %v821_v54  ;;  %v2074_v3 = vpop.f32.mrb[12].mxu0  ;;  %v732_v6 = vsub.f32 0.0, %v2805_v57 }
 0x10a   : > { %v2193_v4 = vpop.eup %2192  ;;  %2212 = vrcp.f32 %v820_v60  ;;  %v2816_v7 = vadd.f32 %v2074_v3, %v2729_v36  ;;  %v623_v8 = vpop.f32.mrb[13].mxu0  ;;  %v776_v19 = vmul.f32 1.442695, %v733_v62  ;;  %v802_v3 = vmul.f32 1.442695, %v746_v31 }
 0x10b   : > { %v2195_v12 = vpop.eup %2194  ;;  %v823_v13 = vadd.f32 1.0, %v2193_v4  ;;  %2214 = vpow2.f32 %v766_v49  ;;  %v2823_v16 = vadd.f32 %v2729_v36, %v623_v8  ;;  %v774_v27 = vmul.f32 1.442695, %v732_v6 }
 0x10c   : > { %v2825_v17 = vpop.eup %2196  ;;  %v822_v18 = vadd.f32 1.0, %v2195_v12  ;;  %2216 = vpow2.f32 %v772_v61  ;;  %v735_v22 = vsub.f32 0.0, %v2816_v7  ;;  %v2859_v6 = vadd.f32 %v2729_v36, %v2786_v24 }
 0x10d   : > { %v2828_v23 = vpop.eup %2198  ;;  %2218 = vrcp.f32 %v823_v13  ;;  %v734_v11 = vsub.f32 0.0, %v2823_v16  ;;  %v2077_v25 = vpop.f32.mrb[14].mxu0 }
 0x10e   : > { %v2201_v26 = vpop.eup %2200  ;;  %2220 = vrcp.f32 %v822_v18  ;;  %v2832_v28 = vadd.f32 %v2077_v25, %v2729_v36  ;;  %v633_v30 = vpop.f32.mrb[15].mxu0  ;;  %v780_v37 = vmul.f32 1.442695, %v735_v22 }
 0x10f   : > { %v2203_v32 = vpop.eup %2202  ;;  %v825_v35 = vadd.f32 1.0, %v2201_v26  ;;  %2222 = vpow2.f32 %v770_v14  ;;  %v2836_v38 = vadd.f32 %v2729_v36, %v633_v30  ;;  %v778_v45 = vmul.f32 1.442695, %v734_v11 }
 0x110   : > { %v2205_v42 = vpop.eup %2204  ;;  %2224 = vpow2.f32 %v776_v19  ;;  %v737_v46 = vsub.f32 0.0, %v2832_v28  ;;  %v915_v49 = vmul.f32 %v2203_v32, %v2732_v39  ;;  %v749_v14 = vsub.f32 0.0, %v2841_v47 }
 0x111   : > { %v2207_v48 = vpop.eup %2206  ;;  %v935_v51 = vmul.f32 %v2205_v42, %v2735_v40  ;;  %2226 = vrcp.f32 %v825_v35  ;;  %v736_v53 = vsub.f32 0.0, %v2836_v38  ;;  %v2080_v54 = vpop.f32.mrb[16].mxu0 }
 0x112   : > { %v2209_v60 = vpop.eup %2208  ;;  %2228 = vpow2.f32 %v774_v27  ;;  %v784_v61 = vmul.f32 1.442695, %v737_v46  ;;  %v2852_v21 = vadd.f32 %v2080_v54, %v2729_v36  ;;  %v643_v62 = vpop.f32.mrb[17].mxu0  ;;  %v914_v19 = vmul.f32 %v2207_v48, %v2738_v43 }
 0x113   : > { %v2211_v39 = vpop.eup %2210  ;;  %2230 = vpow2.f32 %v780_v37  ;;  %v782_v40 = vmul.f32 1.442695, %v736_v53  ;;  %v2855_v4 = vadd.f32 %v2729_v36, %v643_v62  ;;  %v974_v13 = vmul.f32 %v2849_v55, %v935_v51 }
 0x114   : > { %v2213_v8 = vpop.eup %2212  ;;  %2232 = vpow2.f32 %v778_v45  ;;  %v739_v12 = vsub.f32 0.0, %v2852_v21  ;;  %v917_v22 = vmul.f32 %v2211_v39, %v2748_v52  ;;  %v954_v11 = vmul.f32 %v2849_v55, %v915_v49 }
 0x115   : > { %v2215_v18 = vpop.eup %2214  ;;  %2234 = vpow2.f32 %v784_v61  ;;  %v2083_v25 = vpop.f32.mrb[18].mxu0  ;;  %v738_v27 = vsub.f32 0.0, %v2855_v4  ;;  %v1049_v30 = vsel %vm985_vm1, %v974_v13, 0.0  ;;  %v916_v42 = vmul.f32 %v2213_v8, %v2751_v56 }
 0x116   : > { %v2217_v26 = vpop.eup %2216  ;;  %v824_v24 = vadd.f32 1.0, %v2215_v18  ;;  %2236 = vpow2.f32 %v782_v40  ;;  %v653_v31 = vpop.f32.mrb[19].mxu0  ;;  %v788_v37 = vmul.f32 1.442695, %v739_v12  ;;  %1050 = vadd.xlane.f32.xlu1 %v1049_v30  ;;  %v989_v43 = vsel %vm985_vm1, %v954_v11, 0.0 }
 0x117   : > { %v2219_v32 = vpop.eup %2218  ;;  %v827_v35 = vadd.f32 1.0, %v2217_v26  ;;  %2238 = vpow2.f32 %v802_v3  ;;  %990 = vadd.xlane.f32.xlu0 %v989_v43  ;;  %v2872_v45 = vadd.f32 %v2083_v25, %v2729_v36  ;;  %v748_v46 = vsub.f32 0.0, %v2859_v6 }
 0x118   : > { %v2221_v52 = vpop.eup %2220  ;;  %2240 = vrcp.f32 %v824_v24  ;;  %v2876_v49 = vadd.f32 %v2729_v36, %v653_v31  ;;  %v956_v51 = vmul.f32 %v2849_v55, %v917_v22  ;;  %v953_v53 = vmul.f32 %v2849_v55, %v914_v19 }
 0x119   : > { %v2223_v48 = vpop.eup %2222  ;;  %2242 = vrcp.f32 %v827_v35  ;;  %v934_v61 = vmul.f32 %v2209_v60, %v2741_v44  ;;  %v786_v62 = vmul.f32 1.442695, %v738_v27  ;;  %v2883_v3 = vadd.f32 %v2795_v34, %v2729_v36 }
 0x11a   : > { %v2225_v54 = vpop.eup %2224  ;;  %v826_v56 = vadd.f32 1.0, %v2223_v48  ;;  %2244 = vpow2.f32 %v788_v37  ;;  %v995_v8 = vsel %vm985_vm1, %v956_v51, 0.0  ;;  %v986_v12 = vsel %vm985_vm1, %v953_v53, 0.0 }
 0x11b   : > { %v2227_v39 = vpop.eup %2226  ;;  %v829_v40 = vadd.f32 1.0, %v2225_v54  ;;  %v919_v18 = vmul.f32 %v2219_v32, %v2762_v1  ;;  %v918_v19 = vmul.f32 %v2221_v52, %v2766_v5  ;;  %v741_v44 = vsub.f32 0.0, %v2872_v45  ;;  %996 = vadd.xlane.f32.xlu1 %v995_v8  ;;  %987 = vadd.xlane.f32.xlu0 %v986_v12 }
 0x11c   : > { %v2229_v13 = vpop.eup %2228  ;;  %2246 = vrcp.f32 %v826_v56  ;;  %v740_v22 = vsub.f32 0.0, %v2876_v49  ;;  %v955_v11 = vmul.f32 %v2849_v55, %v916_v42  ;;  %v973_v24 = vmul.f32 %v2849_v55, %v934_v61 }
 0x11d   : > { %v2231_v60 = vpop.eup %2230  ;;  %2248 = vrcp.f32 %v829_v40  ;;  %v828_v34 = vadd.f32 1.0, %v2229_v13  ;;  %v2895_v1 = vadd.f32 %v2807_v58, %v2729_v36  ;;  %v2900_v31 = vadd.f32 %v2729_v36, %v2810_v0 }
 0x11e   : > { %v2233_v25 = vpop.eup %2232  ;;  %v831_v26 = vadd.f32 1.0, %v2231_v60  ;;  %2250 = vpow2.f32 %v786_v62  ;;  %v992_v30 = vsel %vm985_vm1, %v955_v11, 0.0  ;;  %v921_v35 = vmul.f32 %v2227_v39, %v2777_v15 }
 0x11f   : > { %v2235_v5 = vpop.eup %2234  ;;  %2252 = vrcp.f32 %v828_v34  ;;  %v830_v27 = vadd.f32 1.0, %v2233_v25  ;;  %993 = vadd.xlane.f32.xlu1 %v992_v30  ;;  %v1046_v43 = vsel %vm985_vm1, %v973_v24, 0.0  ;;  %v2908_v42 = vadd.f32 %v2729_v36, %v2798_v41 }
 0x120   : > { %v2237_v32 = vpop.eup %2236  ;;  %2254 = vrcp.f32 %v831_v26  ;;  %v833_v37 = vadd.f32 1.0, %v2235_v5  ;;  %1047 = vadd.xlane.f32.xlu0 %v1046_v43  ;;  %v958_v0 = vmul.f32 %v2849_v55, %v919_v18  ;;  %v792_v51 = vmul.f32 1.442695, %v741_v44 }
 0x121   : > { %v2904_v52 = vpop.eup %2238  ;;  %2256 = vrcp.f32 %v830_v27  ;;  %v832_v58 = vadd.f32 1.0, %v2237_v32  ;;  %v808_v15 = vmul.f32 1.442695, %v749_v14  ;;  %v957_v53 = vmul.f32 %v2849_v55, %v918_v19 }
 0x122   : > { %v2241_v48 = vpop.eup %2240  ;;  %2258 = vrcp.f32 %v833_v37  ;;  %v790_v56 = vmul.f32 1.442695, %v740_v22  ;;  %v1001_v62 = vsel %vm985_vm1, %v958_v0, 0.0  ;;  %v751_v41 = vsub.f32 0.0, %v2883_v3 }
 0x123   : > { %v2243_v54 = vpop.eup %2242  ;;  %v920_v61 = vmul.f32 %v2241_v48, %v2781_v20  ;;  %2260 = vrcp.f32 %v832_v58  ;;  %1002 = vadd.xlane.f32.xlu1 %v1001_v62  ;;  %v998_v39 = vsel %vm985_vm1, %v957_v53, 0.0  ;;  %v960_v40 = vmul.f32 %v2849_v55, %v921_v35 }
 0x124   : > { %v923_v36 = vmul.f32 %v2243_v54, %v2790_v29  ;;  %v2245_v8 = vpop.eup %2244  ;;  %v841_v14 = vadd.f32 1.0, %v2812_v2  ;;  %v806_v12 = vmul.f32 1.442695, %v748_v46  ;;  %v750_v20 = vsub.f32 0.0, %v2908_v42  ;;  %999 = vadd.xlane.f32.xlu0 %v998_v39 }
 0x125   : > { %v959_v13 = vmul.f32 %v2849_v55, %v920_v61  ;;  %v835_v29 = vadd.f32 1.0, %v2245_v8  ;;  %2262 = vpow2.f32 %v792_v51  ;;  %v753_v19 = vsub.f32 0.0, %v2895_v1 }
 0x126   : > { %v2247_v18 = vpop.eup %2246  ;;  %v752_v44 = vsub.f32 0.0, %v2900_v31  ;;  %2264 = vpow2.f32 %v790_v56  ;;  %v1007_v2 = vsel %vm985_vm1, %v960_v40, 0.0  ;;  %v962_v46 = vmul.f32 %v2849_v55, %v923_v36 }
 0x127   : > { %v2249_v60 = vpop.eup %2248  ;;  %v922_v34 = vmul.f32 %v2247_v18, %v2793_v33  ;;  %2266 = vrcp.f32 %v835_v29  ;;  %v812_v25 = vmul.f32 1.442695, %v751_v41  ;;  %1008 = vadd.xlane.f32.xlu1 %v1007_v2  ;;  %v1004_v26 = vsel %vm985_vm1, %v959_v13, 0.0 }
 0x128   : > { %v2251_v22 = vpop.eup %2250  ;;  %v925_v11 = vmul.f32 %v2249_v60, %v2801_v50  ;;  %2268 = vpow2.f32 %v808_v15  ;;  %v810_v27 = vmul.f32 1.442695, %v750_v20  ;;  %1005 = vadd.xlane.f32.xlu0 %v1004_v26  ;;  %v816_v35 = vmul.f32 1.442695, %v753_v19 }
 0x129   : > { %v2253_v24 = vpop.eup %2252  ;;  %v834_v5 = vadd.f32 1.0, %v2251_v22  ;;  %v961_v33 = vmul.f32 %v2849_v55, %v922_v34  ;;  %2270 = vpow2.f32 %v806_v12  ;;  %v814_v37 = vmul.f32 1.442695, %v752_v44 }
 0x12a   : > { %v2255_v30 = vpop.eup %2254  ;;  %v924_v32 = vmul.f32 %v2253_v24, %v2805_v57  ;;  %v1013_v58 = vsel %vm985_vm1, %v962_v46, 0.0  ;;  %v964_v0 = vmul.f32 %v2849_v55, %v925_v11  ;;  %v840_v54 = vadd.f32 1.0, %v2825_v17 }
 0x12b   : > { %v2257_v43 = vpop.eup %2256  ;;  %v927_v50 = vmul.f32 %v2255_v30, %v2816_v7  ;;  %2272 = vrcp.f32 %v834_v5  ;;  %1014 = vadd.xlane.f32.xlu1 %v1013_v58  ;;  %v1010_v15 = vsel %vm985_vm1, %v961_v33, 0.0  ;;  %v843_v7 = vadd.f32 1.0, %v2828_v23 }
 0x12c   : > { %v2259_v48 = vpop.eup %2258  ;;  %v926_v51 = vmul.f32 %v2257_v43, %v2823_v16  ;;  %2274 = vpow2.f32 %v812_v25  ;;  %v963_v57 = vmul.f32 %v2849_v55, %v924_v32  ;;  %1011 = vadd.xlane.f32.xlu0 %v1010_v15  ;;  %v1019_v56 = vsel %vm985_vm1, %v964_v0, 0.0 }
 0x12d   : > { %v2261_v53 = vpop.eup %2260  ;;  %2276 = vpow2.f32 %v810_v27  ;;  %v929_v61 = vmul.f32 %v2259_v48, %v2832_v28  ;;  %v966_v16 = vmul.f32 %v2849_v55, %v927_v50  ;;  %v842_v28 = vadd.f32 1.0, %v2904_v52 }
 0x12e   : > { %2278 = vpow2.f32 %v816_v35  ;;  %v928_v36 = vmul.f32 %v2261_v53, %v2836_v38  ;;  %v1016_v41 = vsel %vm985_vm1, %v963_v57, 0.0  ;;  %v965_v17 = vmul.f32 %v2849_v55, %v926_v51 }
 0x12f   : > { %2280 = vpow2.f32 %v814_v37  ;;  %v2263_v62 = vpop.eup %2262  ;;  %1020 = vadd.xlane.f32.xlu1 %v1019_v56  ;;  %v1025_v38 = vsel %vm985_vm1, %v966_v16, 0.0 }
 0x130   : > { %2282 = vrcp.f32 %v841_v14  ;;  %v2265_v39 = vpop.eup %2264  ;;  %v837_v23 = vadd.f32 1.0, %v2263_v62  ;;  %1017 = vadd.xlane.f32.xlu0 %v1016_v41  ;;  %v968_v14 = vmul.f32 %v2849_v55, %v929_v61  ;;  %v1022_v18 = vsel %vm985_vm1, %v965_v17, 0.0 }
 0x131   : > { %2284 = vrcp.f32 %v840_v54  ;;  %v2267_v40 = vpop.eup %2266  ;;  %v836_v8 = vadd.f32 1.0, %v2265_v39  ;;  %v967_v29 = vmul.f32 %v2849_v55, %v928_v36 }
 0x132   : > { %2286 = vrcp.f32 %v843_v7  ;;  %v2269_v12 = vpop.eup %2268  ;;  %v931_v20 = vmul.f32 %v2267_v40, %v2852_v21  ;;  %v1031_v2 = vsel %vm985_vm1, %v968_v14, 0.0 }
 0x133   : > { %2288 = vrcp.f32 %v837_v23  ;;  %v2271_v13 = vpop.eup %2270  ;;  %1026 = vadd.xlane.f32.xlu1 %v1025_v38  ;;  %v845_v44 = vadd.f32 1.0, %v2269_v12  ;;  %v1028_v11 = vsel %vm985_vm1, %v967_v29, 0.0  ;;  %v2538_v29 = vmov 0  }
 0x134   : > { %2290 = vrcp.f32 %v836_v8  ;;  %1023 = vadd.xlane.f32.xlu0 %v1022_v18  ;;  %v844_v21 = vadd.f32 1.0, %v2271_v13  ;;  %v970_v46 = vmul.f32 %v2849_v55, %v931_v20  ;;  %2177 = vset.pattern.permute.xlu1 %v2538_v29 }
 0x135   : > { %v2273_v19 = vpop.eup %2272  ;;  %2292 = vrcp.f32 %v842_v28  ;;  %2176 = vset.pattern.permute.xlu0 %v2538_v29 }
 0x136   : > { %v2275_v52 = vpop.eup %2274  ;;  %v930_v60 = vmul.f32 %v2273_v19, %v2855_v4  ;;  %2294 = vrcp.f32 %v845_v44  ;;  %v1037_v32 = vsel %vm985_vm1, %v970_v46, 0.0 }
 0x137   : > { %v2277_v34 = vpop.eup %2276  ;;  %1032 = vadd.xlane.f32.xlu1 %v1031_v2  ;;  %v847_v24 = vadd.f32 1.0, %v2275_v52  ;;  %2296 = vrcp.f32 %v844_v21  ;;  %v2997_v21 = vld [vmem:[#allocation2] ss:$0 sm:$0xff] }
 0x138   : > { %v2279_v22 = vpop.eup %2278  ;;  %v969_v25 = vmul.f32 %v2849_v55, %v930_v60  ;;  %1029 = vadd.xlane.f32.xlu0 %v1028_v11  ;;  %v846_v4 = vadd.f32 1.0, %v2277_v34 }
 0x139   : > { %v2281_v26 = vpop.eup %2280  ;;  %v849_v5 = vadd.f32 1.0, %v2279_v22 }
 0x13a   : > { %v2283_v27 = vpop.eup %2282  ;;  %v848_v33 = vadd.f32 1.0, %v2281_v26  ;;  %v1034_v37 = vsel %vm985_vm1, %v969_v25, 0.0 }
 0x13b   : > { %v2285_v30 = vpop.eup %2284  ;;  %2298 = vrcp.f32 %v849_v5  ;;  %1038 = vadd.xlane.f32.xlu1 %v1037_v32  ;;  %v937_v58 = vmul.f32 %v2283_v27, %v2755_v59 }
 0x13c   : > { %v2287_v35 = vpop.eup %2286  ;;  %2300 = vrcp.f32 %v848_v33  ;;  %1035 = vadd.xlane.f32.xlu0 %v1034_v37  ;;  %v936_v48 = vmul.f32 %v2285_v30, %v2759_v63 }
 0x13d   : > { %v2289_v43 = vpop.eup %2288  ;;  %2302 = vrcp.f32 %v847_v24  ;;  %v939_v53 = vmul.f32 %v2287_v35, %v2771_v10  ;;  %v976_v61 = vmul.f32 %v2849_v55, %v937_v58 }
 0x13e   : > { %v2291_v50 = vpop.eup %2290  ;;  %v933_v0 = vmul.f32 %v2289_v43, %v2872_v45  ;;  %2304 = vrcp.f32 %v846_v4  ;;  %v975_v63 = vmul.f32 %v2849_v55, %v936_v48 }
 0x13f   : > { %v932_v51 = vmul.f32 %v2291_v50, %v2876_v49  ;;  %v2293_v15 = vpop.eup %2292  ;;  %v978_v62 = vmul.f32 %v2849_v55, %v939_v53  ;;  %v1055_v17 = vsel %vm985_vm1, %v976_v61, 0.0 }
 0x140   : > { %v972_v57 = vmul.f32 %v2849_v55, %v933_v0  ;;  %v2295_v56 = vpop.eup %2294  ;;  %v938_v59 = vmul.f32 %v2293_v15, %v2820_v9  ;;  %v1052_v40 = vsel %vm985_vm1, %v975_v63, 0.0 }
 0x141   : > { %v971_v54 = vmul.f32 %v2849_v55, %v932_v51  ;;  %v2297_v49 = vpop.eup %2296  ;;  %v941_v36 = vmul.f32 %v2295_v56, %v2841_v47  ;;  %v1061_v47 = vsel %vm985_vm1, %v978_v62, 0.0 }
 0x142   : > { %v1043_v7 = vsel %vm985_vm1, %v972_v57, 0.0  ;;  %v940_v9 = vmul.f32 %v2297_v49, %v2859_v6  ;;  %v977_v28 = vmul.f32 %v2849_v55, %v938_v59 }
 0x143   : > { %1044 = vadd.xlane.f32.xlu1 %v1043_v7  ;;  %v1040_v45 = vsel %vm985_vm1, %v971_v54, 0.0  ;;  %v980_v38 = vmul.f32 %v2849_v55, %v941_v36 }
 0x144   : > { %1041 = vadd.xlane.f32.xlu0 %v1040_v45  ;;  %v1058_v14 = vsel %vm985_vm1, %v977_v28, 0.0  ;;  %v979_v13 = vmul.f32 %v2849_v55, %v940_v9 }
 0x145   : > { %v2299_v16 = vpop.eup %2298  ;;  %v1067_v19 = vsel %vm985_vm1, %v980_v38, 0.0 }
 0x146   : > { %v2301_v10 = vpop.eup %2300  ;;  %v945_v41 = vmul.f32 %v2299_v16, %v2895_v1  ;;  %v1064_v44 = vsel %vm985_vm1, %v979_v13, 0.0 }
 0x147   : > { %v2303_v39 = vpop.eup %2302  ;;  %v944_v23 = vmul.f32 %v2301_v10, %v2900_v31  ;;  %1056 = vadd.xlane.f32.xlu1 %v1055_v17 }
 0x148   : > { %v2305_v8 = vpop.eup %2304  ;;  %1053 = vadd.xlane.f32.xlu0 %v1052_v40  ;;  %v984_v12 = vmul.f32 %v2849_v55, %v945_v41  ;;  %v943_v20 = vmul.f32 %v2303_v39, %v2883_v3 }
 0x149   : > { %v983_v1 = vmul.f32 %v2849_v55, %v944_v23  ;;  %v942_v31 = vmul.f32 %v2305_v8, %v2908_v42 }
 0x14a   : > { %v1079_v6 = vsel %vm985_vm1, %v984_v12, 0.0  ;;  %v982_v3 = vmul.f32 %v2849_v55, %v943_v20 }
 0x14b   : > { %1062 = vadd.xlane.f32.xlu1 %v1061_v47  ;;  %v1076_v18 = vsel %vm985_vm1, %v983_v1, 0.0  ;;  %v981_v42 = vmul.f32 %v2849_v55, %v942_v31 }
 0x14c   : > { %1059 = vadd.xlane.f32.xlu0 %v1058_v14  ;;  %v1073_v52 = vsel %vm985_vm1, %v982_v3, 0.0 }
 0x14d   : > { %v1070_v60 = vsel %vm985_vm1, %v981_v42, 0.0 }
 0x14f   : > { %1068 = vadd.xlane.f32.xlu1 %v1067_v19 }
 0x150   : > { %1065 = vadd.xlane.f32.xlu0 %v1064_v44 }
 0x153   : > { %1074 = vadd.xlane.f32.xlu1 %v1073_v52 }
 0x154   : > { %1071 = vadd.xlane.f32.xlu0 %v1070_v60 }
 0x157   : > { %1080 = vadd.xlane.f32.xlu1 %v1079_v6 }
 0x158   : > { %1077 = vadd.xlane.f32.xlu0 %v1076_v18 }
 0x1a3   : > { %v1051_v34 = vpop.xlane.xlu1 %1050 }
 0x1a4   : > { %v1110_v2 = vadd.f32 %v2997_v21, %v1051_v34  ;;  %v991_v46 = vpop.xlane.xlu0 %990 }
 0x1a5   : > { %v1090_v22 = vadd.f32 %v2997_v21, %v991_v46 }
 0x1a6   : > { %v1142_v11 = vsub.f32 0.0, %v1110_v2 }
 0x1a7   : > { %v1122_v25 = vsub.f32 0.0, %v1090_v22 }
 0x1a8   : > { %v997_v55 = vpop.xlane.xlu1 %996  ;;  %v988_v26 = vpop.xlane.xlu0 %987  ;;  %v1195_v4 = vmul.f32 1.442695, %v1142_v11 }
 0x1a9   : > { %v1155_v24 = vmul.f32 1.442695, %v1122_v25  ;;  %v1092_v5 = vadd.f32 %v2997_v21, %v997_v55  ;;  %v1089_v27 = vadd.f32 %v2997_v21, %v988_v26 }
 0x1ab   : > { %2306 = vpow2.f32 %v1155_v24  ;;  %v1124_v33 = vsub.f32 0.0, %v1092_v5  ;;  %v1121_v30 = vsub.f32 0.0, %v1089_v27 }
 0x1ac   : > { %v994_v32 = vpop.xlane.xlu1 %993  ;;  %2308 = vpow2.f32 %v1195_v4 }
 0x1ad   : > { %v1153_v35 = vmul.f32 1.442695, %v1121_v30  ;;  %v1091_v37 = vadd.f32 %v2997_v21, %v994_v32  ;;  %v1048_v43 = vpop.xlane.xlu0 %1047  ;;  %v1159_v58 = vmul.f32 1.442695, %v1124_v33 }
 0x1ae   : > { %v1109_v50 = vadd.f32 %v2997_v21, %v1048_v43 }
 0x1af   : > { %v1123_v0 = vsub.f32 0.0, %v1091_v37  ;;  %2310 = vpow2.f32 %v1153_v35 }
 0x1b0   : > { %v1141_v48 = vsub.f32 0.0, %v1109_v50  ;;  %v1003_v51 = vpop.xlane.xlu1 %1002  ;;  %2312 = vpow2.f32 %v1159_v58 }
 0x1b1   : > { %v1094_v15 = vadd.f32 %v2997_v21, %v1003_v51  ;;  %v1000_v57 = vpop.xlane.xlu0 %999  ;;  %v1157_v7 = vmul.f32 1.442695, %v1123_v0 }
 0x1b2   : > { %v1193_v53 = vmul.f32 1.442695, %v1141_v48  ;;  %v1093_v54 = vadd.f32 %v2997_v21, %v1000_v57 }
 0x1b3   : > { %v1126_v61 = vsub.f32 0.0, %v1094_v15 }
 0x1b4   : > { %2314 = vpow2.f32 %v1193_v53  ;;  %v1009_v56 = vpop.xlane.xlu1 %1008  ;;  %v1125_v16 = vsub.f32 0.0, %v1093_v54 }
 0x1b5   : > { %v2307_v59 = vpop.eup %2306  ;;  %v1006_v45 = vpop.xlane.xlu0 %1005  ;;  %v1163_v49 = vmul.f32 1.442695, %v1126_v61  ;;  %v1096_v62 = vadd.f32 %v2997_v21, %v1009_v56  ;;  %2316 = vpow2.f32 %v1157_v7 }
 0x1b6   : > { %v1218_v63 = vadd.f32 1.0, %v2307_v59  ;;  %v2309_v36 = vpop.eup %2308  ;;  %v1161_v9 = vmul.f32 1.442695, %v1125_v16  ;;  %v1095_v28 = vadd.f32 %v2997_v21, %v1006_v45 }
 0x1b7   : > { %v1128_v23 = vsub.f32 0.0, %v1096_v62  ;;  %v1238_v12 = vadd.f32 1.0, %v2309_v36 }
 0x1b8   : > { %2318 = vrcp.f32 %v1218_v63  ;;  %v1015_v10 = vpop.xlane.xlu1 %1014  ;;  %v1127_v29 = vsub.f32 0.0, %v1095_v28 }
 0x1b9   : > { %v1098_v41 = vadd.f32 %v2997_v21, %v1015_v10  ;;  %v1012_v17 = vpop.xlane.xlu0 %1011  ;;  %v2311_v39 = vpop.eup %2310  ;;  %2320 = vpow2.f32 %v1163_v49  ;;  %v1167_v14 = vmul.f32 1.442695, %v1128_v23 }
 0x1ba   : > { %v1217_v40 = vadd.f32 1.0, %v2311_v39  ;;  %v2313_v1 = vpop.eup %2312  ;;  %v1097_v13 = vadd.f32 %v2997_v21, %v1012_v17  ;;  %v1165_v11 = vmul.f32 1.442695, %v1127_v29 }
 0x1bb   : > { %v1130_v8 = vsub.f32 0.0, %v1098_v41  ;;  %v1220_v42 = vadd.f32 1.0, %v2313_v1 }
 0x1bc   : > { %v1021_v47 = vpop.xlane.xlu1 %1020  ;;  %2322 = vrcp.f32 %v1217_v40  ;;  %v1129_v46 = vsub.f32 0.0, %v1097_v13 }
 0x1bd   : > { %v1171_v20 = vmul.f32 1.442695, %v1130_v8  ;;  %v1100_v38 = vadd.f32 %v2997_v21, %v1021_v47  ;;  %v1018_v6 = vpop.xlane.xlu0 %1017  ;;  %2324 = vpow2.f32 %v1161_v9 }
 0x1be   : > { %v2315_v31 = vpop.eup %2314  ;;  %v1099_v22 = vadd.f32 %v2997_v21, %v1018_v6  ;;  %v1169_v30 = vmul.f32 1.442695, %v1129_v46 }
 0x1bf   : > { %v1237_v18 = vadd.f32 1.0, %v2315_v31  ;;  %2326 = vpow2.f32 %v1171_v20  ;;  %v1132_v19 = vsub.f32 0.0, %v1100_v38  ;;  %v2317_v44 = vpop.eup %2316 }
 0x1c0   : > { %2328 = vrcp.f32 %v1238_v12  ;;  %v1027_v3 = vpop.xlane.xlu1 %1026  ;;  %v1219_v26 = vadd.f32 1.0, %v2317_v44  ;;  %v1131_v32 = vsub.f32 0.0, %v1099_v22 }
 0x1c1   : > { %2330 = vrcp.f32 %v1237_v18  ;;  %v1175_v52 = vmul.f32 1.442695, %v1132_v19  ;;  %v1102_v60 = vadd.f32 %v2997_v21, %v1027_v3  ;;  %v1024_v34 = vpop.xlane.xlu0 %1023 }
 0x1c2   : > { %v2319_v2 = vpop.eup %2318  ;;  %2332 = vpow2.f32 %v1167_v14  ;;  %v1101_v24 = vadd.f32 %v2997_v21, %v1024_v34  ;;  %v1173_v7 = vmul.f32 1.442695, %v1131_v32 }
 0x1c3   : > { %2334 = vpow2.f32 %v1175_v52  ;;  %v1134_v25 = vsub.f32 0.0, %v1102_v60  ;;  %1320 = vperm.xlu1 %2177, %v2319_v2   ;;  %v2321_v55 = vpop.eup %2320 }
 0x1c4   : > { %v1033_v5 = vpop.xlane.xlu1 %1032  ;;  %2336 = vrcp.f32 %v1220_v42  ;;  %v1222_v37 = vadd.f32 1.0, %v2321_v55  ;;  %v1133_v58 = vsub.f32 0.0, %v1101_v24 }
 0x1c5   : > { %v1179_v27 = vmul.f32 1.442695, %v1134_v25  ;;  %v1104_v4 = vadd.f32 %v2997_v21, %v1033_v5  ;;  %v1030_v33 = vpop.xlane.xlu0 %1029  ;;  %2338 = vpow2.f32 %v1165_v11 }
 0x1c6   : > { %v2323_v35 = vpop.eup %2322  ;;  %2340 = vrcp.f32 %v1219_v26  ;;  %v1103_v15 = vadd.f32 %v2997_v21, %v1030_v33  ;;  %v1177_v16 = vmul.f32 1.442695, %v1133_v58 }
 0x1c7   : > { %v1136_v43 = vsub.f32 0.0, %v1104_v4  ;;  %v2325_v50 = vpop.eup %2324  ;;  %1315 = vperm.xlu0 %2176, %v2323_v35   ;;  %2342 = vpow2.f32 %v1179_v27 }
 0x1c8   : > { %v1039_v0 = vpop.xlane.xlu1 %1038  ;;  %2344 = vpow2.f32 %v1169_v30  ;;  %v1221_v59 = vadd.f32 1.0, %v2325_v50  ;;  %v1135_v62 = vsub.f32 0.0, %v1103_v15 }
 0x1c9   : > { %v2327_v48 = vpop.eup %2326  ;;  %v1183_v51 = vmul.f32 1.442695, %v1136_v43  ;;  %v1106_v57 = vadd.f32 %v2997_v21, %v1039_v0  ;;  %v1036_v61 = vpop.xlane.xlu0 %1035  ;;  %2346 = vrcp.f32 %v1222_v37 }
 0x1ca   : > { %v2329_v53 = vpop.eup %2328  ;;  %v1226_v54 = vadd.f32 1.0, %v2327_v48  ;;  %v1105_v17 = vadd.f32 %v2997_v21, %v1036_v61  ;;  %v1181_v8 = vmul.f32 1.442695, %v1135_v62 }
 0x1cb   : > { %v2331_v56 = vpop.eup %2330  ;;  %v1138_v45 = vsub.f32 0.0, %v1106_v57  ;;  %1420 = vperm.xlu0 %2176, %v2329_v53  }
 0x1cc   : > { %v2333_v63 = vpop.eup %2332  ;;  %2348 = vrcp.f32 %v1226_v54  ;;  %1415 = vperm.xlu1 %2177, %v2331_v56   ;;  %v1137_v20 = vsub.f32 0.0, %v1105_v17 }
 0x1cd   : > { %v2335_v49 = vpop.eup %2334  ;;  %2350 = vpow2.f32 %v1183_v51  ;;  %v1187_v36 = vmul.f32 1.442695, %v1138_v45  ;;  %v1224_v9 = vadd.f32 1.0, %v2333_v63 }
 0x1ce   : > { %v1228_v10 = vadd.f32 1.0, %v2335_v49  ;;  %2352 = vpow2.f32 %v1173_v7  ;;  %v2337_v41 = vpop.eup %2336  ;;  %v1185_v60 = vmul.f32 1.442695, %v1137_v20 }
 0x1cf   : > { %2354 = vrcp.f32 %v1221_v59  ;;  %v2339_v28 = vpop.eup %2338 }
 0x1d0   : > { %v1045_v39 = vpop.xlane.xlu1 %1044  ;;  %2356 = vrcp.f32 %v1228_v10  ;;  %1330 = vperm.xlu1 %2177, %v2337_v41   ;;  %v2341_v12 = vpop.eup %2340  ;;  %v1223_v3 = vadd.f32 1.0, %v2339_v28 }
 0x1d1   : > { %v1108_v23 = vadd.f32 %v2997_v21, %v1045_v39  ;;  %v1042_v40 = vpop.xlane.xlu0 %1041  ;;  %2358 = vpow2.f32 %v1177_v16  ;;  %v2343_v1 = vpop.eup %2342 }
 0x1d2   : > { %2360 = vpow2.f32 %v1187_v36  ;;  %v1107_v38 = vadd.f32 %v2997_v21, %v1042_v40  ;;  %v2345_v31 = vpop.eup %2344  ;;  %v1230_v14 = vadd.f32 1.0, %v2343_v1 }
 0x1d3   : > { %v1140_v47 = vsub.f32 0.0, %v1108_v23  ;;  %2362 = vrcp.f32 %v1224_v9  ;;  %v2347_v19 = vpop.eup %2346  ;;  %v1225_v5 = vadd.f32 1.0, %v2345_v31 }
 0x1d4   : > { %v1057_v6 = vpop.xlane.xlu1 %1056  ;;  %1325 = vperm.xlu1 %2177, %v2341_v12   ;;  %2364 = vpow2.f32 %v1181_v8  ;;  %v1139_v34 = vsub.f32 0.0, %v1107_v38 }
 0x1d5   : > { %v1191_v13 = vmul.f32 1.442695, %v1140_v47  ;;  %v1112_v18 = vadd.f32 %v2997_v21, %v1057_v6  ;;  %v1054_v29 = vpop.xlane.xlu0 %1053  ;;  %2366 = vrcp.f32 %v1230_v14 }
 0x1d6   : > { %v2349_v44 = vpop.eup %2348  ;;  %v1111_v2 = vadd.f32 %v2997_v21, %v1054_v29  ;;  %v1189_v32 = vmul.f32 1.442695, %v1139_v34 }
 0x1d7   : > { %v1144_v42 = vsub.f32 0.0, %v1112_v18  ;;  %v2351_v52 = vpop.eup %2350  ;;  %1360 = vperm.xlu0 %2176, %v2349_v44   ;;  %2368 = vpow2.f32 %v1191_v13 }
 0x1d8   : > { %v1063_v46 = vpop.xlane.xlu1 %1062  ;;  %v2353_v22 = vpop.eup %2352  ;;  %v1232_v11 = vadd.f32 1.0, %v2351_v52  ;;  %1340 = vperm.xlu1 %2177, %v2347_v19   ;;  %2370 = vrcp.f32 %v1223_v3  ;;  %v1143_v43 = vsub.f32 0.0, %v1111_v2 }
 0x1d9   : > { %v1199_v25 = vmul.f32 1.442695, %v1144_v42  ;;  %v1114_v55 = vadd.f32 %v2997_v21, %v1063_v46  ;;  %v1060_v26 = vpop.xlane.xlu0 %1059  ;;  %v2355_v24 = vpop.eup %2354  ;;  %v1227_v48 = vadd.f32 1.0, %v2353_v22 }
 0x1da   : > { %v2357_v27 = vpop.eup %2356  ;;  %2372 = vrcp.f32 %v1232_v11  ;;  %v1113_v33 = vadd.f32 %v2997_v21, %v1060_v26  ;;  %v1197_v45 = vmul.f32 1.442695, %v1143_v43 }
 0x1db   : > { %v1146_v4 = vsub.f32 0.0, %v1114_v55  ;;  %v2359_v30 = vpop.eup %2358  ;;  %2374 = vpow2.f32 %v1185_v60  ;;  %1370 = vperm.xlu0 %2176, %v2357_v27  }
 0x1dc   : > { %v1069_v35 = vpop.xlane.xlu1 %1068  ;;  %v2361_v37 = vpop.eup %2360  ;;  %2376 = vpow2.f32 %v1199_v25  ;;  %1335 = vperm.xlu1 %2177, %v2355_v24   ;;  %v1145_v57 = vsub.f32 0.0, %v1113_v33  ;;  %v1229_v61 = vadd.f32 1.0, %v2359_v30 }
 0x1dd   : > { %v1203_v50 = vmul.f32 1.442695, %v1146_v4  ;;  %v1116_v58 = vadd.f32 %v2997_v21, %v1069_v35  ;;  %v1066_v0 = vpop.xlane.xlu0 %1065  ;;  %2378 = vrcp.f32 %v1225_v5  ;;  %v1234_v51 = vadd.f32 1.0, %v2361_v37  ;;  %v2363_v15 = vpop.eup %2362 }
 0x1de   : > { %v1115_v54 = vadd.f32 %v2997_v21, %v1066_v0  ;;  %v2365_v7 = vpop.eup %2364  ;;  %v1201_v10 = vmul.f32 1.442695, %v1145_v57 }
 0x1df   : > { %2380 = vpow2.f32 %v1203_v50  ;;  %v1148_v53 = vsub.f32 0.0, %v1116_v58  ;;  %v2367_v59 = vpop.eup %2366  ;;  %v1231_v39 = vadd.f32 1.0, %v2365_v7 }
 0x1e0   : > { %2382 = vrcp.f32 %v1234_v51  ;;  %v1075_v56 = vpop.xlane.xlu1 %1074  ;;  %1350 = vperm.xlu1 %2177, %v2363_v15   ;;  %1380 = vperm.xlu0 %2176, %v2367_v59   ;;  %v1147_v36 = vsub.f32 0.0, %v1115_v54 }
 0x1e1   : > { %2384 = vpow2.f32 %v1189_v32  ;;  %v1207_v63 = vmul.f32 1.442695, %v1148_v53  ;;  %v1118_v49 = vadd.f32 %v2997_v21, %v1075_v56  ;;  %v1072_v16 = vpop.xlane.xlu0 %1071  ;;  %v2369_v62 = vpop.eup %2368 }
 0x1e2   : > { %2386 = vrcp.f32 %v1227_v48  ;;  %v2371_v17 = vpop.eup %2370  ;;  %v1236_v9 = vadd.f32 1.0, %v2369_v62  ;;  %v1117_v8 = vadd.f32 %v2997_v21, %v1072_v16  ;;  %v1205_v38 = vmul.f32 1.442695, %v1147_v36  ;;  %v1646_v16 = vld [vmem:[%s3281_s6] sm:$0xff]  ;;  %v1647_v62 = vld [vmem:[%s3281_s6 + $0x8] sm:$0xff] }
 0x1e3   : > { %2388 = vpow2.f32 %v1207_v63  ;;  %v1150_v41 = vsub.f32 0.0, %v1118_v49  ;;  %v2126_v36 = vpack.c.bf16 %v1647_v62, %v1646_v16 }
 0x1e4   : > { %2390 = vrcp.f32 %v1229_v61  ;;  %v1081_v23 = vpop.xlane.xlu1 %1080  ;;  %v2373_v40 = vpop.eup %2372  ;;  %1345 = vperm.xlu1 %2177, %v2371_v17   ;;  %v1149_v29 = vsub.f32 0.0, %v1117_v8 }
 0x1e5   : > { %2392 = vpow2.f32 %v1197_v45  ;;  %v1211_v28 = vmul.f32 1.442695, %v1150_v41  ;;  %v1120_v12 = vadd.f32 %v2997_v21, %v1081_v23  ;;  %v1078_v47 = vpop.xlane.xlu0 %1077  ;;  %v2375_v1 = vpop.eup %2374  ;;  %1390 = vperm.xlu0 %2176, %v2373_v40   ;;  %v2541_v41 = vmov 0.0   ;;  %v2442_v40 = vld [vmem:[%s2660_s14] sm:$0xff] }
 0x1e6   : > { %2394 = vrcp.f32 %v1236_v9  ;;  %v2377_v20 = vpop.eup %2376  ;;  %v1119_v13 = vadd.f32 %v2997_v21, %v1078_v47  ;;  %v1233_v44 = vadd.f32 1.0, %v2375_v1  ;;  %v1209_v46 = vmul.f32 1.442695, %v1149_v29  ;;  %2106 = vmatprep.mubr.msk.f32.mxu1 %vm2540_vm2, %v2541_v41  ;;  %v2443_v47 = vld [vmem:[%s2660_s14 + $0x8] sm:$0xff] }
 0x1e7   : > { %2396 = vpow2.f32 %v1201_v10  ;;  %v1152_v6 = vsub.f32 0.0, %v1120_v12  ;;  %v2379_v31 = vpop.eup %2378  ;;  %v1240_v14 = vadd.f32 1.0, %v2377_v20  ;;  %v2539_v10 = vmov 0.0|0.0   ;;  %v2444_v20 = vld [vmem:[%s2660_s14 + $0x10] sm:$0xff] }
 0x1e8   : > { %2398 = vpow2.f32 %v1211_v28  ;;  %1355 = vperm.xlu1 %2177, %v2379_v31   ;;  %v1151_v34 = vsub.f32 0.0, %v1119_v13  ;;  %2125 = vmatprep.subr.bf16.mxu1 %v2539_v10 }
 0x1e9   : > { %v2381_v18 = vpop.eup %2380  ;;  %2400 = vrcp.f32 %v1231_v39  ;;  %v1215_v19 = vmul.f32 1.442695, %v1152_v6  ;;  %2127 = vmatpush3.bf16.msra.mxu1 %v2126_v36 }
 0x1ea   : > { %v2383_v3 = vpop.eup %2382  ;;  %2402 = vrcp.f32 %v1240_v14  ;;  %v1242_v42 = vadd.f32 1.0, %v2381_v18  ;;  %v1213_v26 = vmul.f32 1.442695, %v1151_v34  ;;  %2128 = vmatprep.subr.bf16.mxu1 %v2539_v10 }
 0x1eb   : > { %v2385_v52 = vpop.eup %2384  ;;  %2404 = vpow2.f32 %v1205_v38  ;;  %1400 = vperm.xlu0 %2176, %v2383_v3  }
 0x1ec   : > { %v2387_v60 = vpop.eup %2386  ;;  %2406 = vrcp.f32 %v1242_v42  ;;  %v1235_v22 = vadd.f32 1.0, %v2385_v52 }
 0x1ed   : > { %v2389_v2 = vpop.eup %2388  ;;  %2408 = vpow2.f32 %v1215_v19  ;;  %1365 = vperm.xlu1 %2177, %v2387_v60   ;;  %v2445_v19 = vld [vmem:[%s2660_s14 + $0x18] sm:$0xff]  ;;  %v2446_v60 = vld [vmem:[%s2660_s14 + $0x20] sm:$0xff] }
 0x1ee   : > { %v2391_v21 = vpop.eup %2390  ;;  %2410 = vrcp.f32 %v1233_v44  ;;  %v1244_v11 = vadd.f32 1.0, %v2389_v2 }
 0x1ef   : > { %v2393_v25 = vpop.eup %2392 }
 0x1f0   : > { %v2395_v55 = vpop.eup %2394  ;;  %2412 = vrcp.f32 %v1244_v11  ;;  %v1239_v27 = vadd.f32 1.0, %v2393_v25  ;;  %v2447_v11 = vld [vmem:[%s2660_s14 + $0x28] sm:$0xff] }
 0x1f1   : > { %v2397_v24 = vpop.eup %2396  ;;  %2414 = vpow2.f32 %v1209_v46  ;;  %1410 = vperm.xlu0 %2176, %v2395_v55   ;;  %1375 = vperm.xlu1 %2177, %v2391_v21  }
 0x1f2   : > { %v2399_v5 = vpop.eup %2398  ;;  %2416 = vrcp.f32 %v1235_v22  ;;  %v1241_v35 = vadd.f32 1.0, %v2397_v24 }
 0x1f3   : > { %v2401_v4 = vpop.eup %2400  ;;  %v1246_v33 = vadd.f32 1.0, %v2399_v5  ;;  %2418 = vpow2.f32 %v1213_v26 }
 0x1f4   : > { %v2403_v30 = vpop.eup %2402 }
 0x1f5   : > { %v2405_v32 = vpop.eup %2404  ;;  %2420 = vrcp.f32 %v1246_v33  ;;  %1430 = vperm.xlu0 %2176, %v2403_v30   ;;  %1385 = vperm.xlu1 %2177, %v2401_v4   ;;  %v2449_v33 = vld [vmem:[%s2660_s14 + $0x30] sm:$0xff] }
 0x1f6   : > { %v2407_v37 = vpop.eup %2406  ;;  %2422 = vrcp.f32 %v1239_v27  ;;  %v1243_v48 = vadd.f32 1.0, %v2405_v32  ;;  %v2448_v27 = vld [vmem:[%s2660_s14 + $0x38] sm:$0xff] }
 0x1f7   : > { %v2409_v43 = vpop.eup %2408  ;;  %2424 = vrcp.f32 %v1241_v35 }
 0x1f8   : > { %v2411_v50 = vpop.eup %2410  ;;  %v1248_v58 = vadd.f32 1.0, %v2409_v43 }
 0x1f9   : > { %1440 = vperm.xlu0 %2176, %v2407_v37   ;;  %1395 = vperm.xlu1 %2177, %v2411_v50  }
 0x1fa   : > { %v2413_v0 = vpop.eup %2412  ;;  %2426 = vrcp.f32 %v1248_v58  ;;  %v2450_v58 = vld [vmem:[%s2660_s14 + $0x48] sm:$0xff] }
 0x1fb   : > { %v2415_v51 = vpop.eup %2414  ;;  %2428 = vrcp.f32 %v1243_v48 }
 0x1fc   : > { %v2417_v15 = vpop.eup %2416  ;;  %v1245_v53 = vadd.f32 1.0, %v2415_v51  ;;  %v2451_v51 = vld [vmem:[%s2660_s14 + $0x40] sm:$0xff] }
 0x1fd   : > { %1450 = vperm.xlu0 %2176, %v2413_v0   ;;  %1405 = vperm.xlu1 %2177, %v2417_v15   ;;  %v2419_v57 = vpop.eup %2418 }
 0x1fe   : > { %2430 = vrcp.f32 %v1245_v53  ;;  %v1247_v61 = vadd.f32 1.0, %v2419_v57 }
 0x1ff   : > { %v2421_v54 = vpop.eup %2420 }
 0x200   : > { %v2423_v7 = vpop.eup %2422  ;;  %2432 = vrcp.f32 %v1247_v61 }
 0x201   : > { %1460 = vperm.xlu0 %2176, %v2421_v54   ;;  %1425 = vperm.xlu1 %2177, %v2423_v7   ;;  %v2425_v56 = vpop.eup %2424 }
 0x204   : > { %v2427_v59 = vpop.eup %2426 }
 0x205   : > { %1470 = vperm.xlu0 %2176, %v2427_v59   ;;  %1435 = vperm.xlu1 %2177, %v2425_v56   ;;  %v2429_v45 = vpop.eup %2428  ;;  %v2452_v59 = vld [vmem:[%s2660_s14 + $0x58] sm:$0xff] }
 0x208   : > { %v2431_v63 = vpop.eup %2430 }
 0x209   : > { %1445 = vperm.xlu1 %2177, %v2429_v45  }
 0x20a   : > { %v2433_v49 = vpop.eup %2432 }
 0x20d   : > { %1455 = vperm.xlu1 %2177, %v2431_v63   ;;  %v2453_v63 = vld [vmem:[%s2660_s14 + $0x50] sm:$0xff] }
 0x211   : > { %1465 = vperm.xlu1 %2177, %v2433_v49  }
 0x242   : > { %v1321_v17 = vpop.permute.xlu1 %1320 }
 0x243   : > { %v3047_v1 = vmul.f32 %v2443_v47, %v1321_v17 }
 0x245   : > { %v1506_v13 = vsel %vm400_vm0, %v3047_v1, 0.0 }
 0x246   : > { %v1316_v9 = vpop.permute.xlu0 %1315 }
 0x247   : > { %v3042_v28 = vmul.f32 %v2442_v40, %v1316_v9 }
 0x249   : > { %v1505_v6 = vsel %vm400_vm0, %v3042_v28, 0.0 }
 0x24a   : > { %v3044_v8 = vpop.permute.xlu0 %1420  ;;  %v1507_v29 = vadd.f32 %v1506_v13, %v1505_v6 }
 0x24b   : > { %v3039_v39 = vpop.permute.xlu1 %1415 }
 0x24f   : > { %v1331_v23 = vpop.permute.xlu1 %1330 }
 0x250   : > { %v3059_v3 = vmul.f32 %v2445_v19, %v1331_v23  ;;  %v2454_v23 = vld [vmem:[%s2660_s14 + $0x68] sm:$0xff] }
 0x252   : > { %v1510_v2 = vsel %vm400_vm0, %v3059_v3, 0.0 }
 0x253   : > { %v1326_v12 = vpop.permute.xlu1 %1325 }
 0x254   : > { %v3050_v38 = vmul.f32 %v2444_v20, %v1326_v12  ;;  %v2455_v12 = vld [vmem:[%s2660_s14 + $0x60] sm:$0xff] }
 0x256   : > { %v1361_v31 = vpop.permute.xlu0 %1360  ;;  %v1508_v18 = vsel %vm400_vm0, %v3050_v38, 0.0 }
 0x257   : > { %v1341_v14 = vpop.permute.xlu1 %1340  ;;  %v1509_v42 = vadd.f32 %v1508_v18, %v1507_v29  ;;  %v3077_v0 = vmul.f32 %v2450_v58, %v1361_v31  ;;  %v2456_v29 = vld [vmem:[%s2660_s14 + $0x78] sm:$0xff] }
 0x258   : > { %v1478_v25 = vmul.f32 %v2447_v11, %v1341_v14 }
 0x259   : > { %v1511_v21 = vadd.f32 %v1510_v2, %v1509_v42  ;;  %v1522_v56 = vsel %vm400_vm0, %v3077_v0, 0.0 }
 0x25a   : > { %v1371_v44 = vpop.permute.xlu0 %1370  ;;  %v1514_v5 = vsel %vm400_vm0, %v1478_v25, 0.0 }
 0x25b   : > { %v1336_v52 = vpop.permute.xlu1 %1335  ;;  %v3088_v45 = vmul.f32 %v2452_v59, %v1371_v44  ;;  %v2457_v44 = vld [vmem:[%s2660_s14 + $0x70] sm:$0xff]  ;;  %v1575_v59 = vsel %vm400_vm0, %v3042_v28, -inf }
 0x25c   : > { %v3062_v34 = vmul.f32 %v2446_v60, %v1336_v52 }
 0x25d   : > { %v1526_v9 = vsel %vm400_vm0, %v3088_v45, 0.0 }
 0x25e   : > { %v1512_v46 = vsel %vm400_vm0, %v3062_v34, 0.0  ;;  %v1579_v28 = vsel %vm400_vm0, %v3062_v34, -inf }
 0x25f   : > { %v1351_v22 = vpop.permute.xlu1 %1350  ;;  %v1381_v55 = vpop.permute.xlu0 %1380  ;;  %v1513_v26 = vadd.f32 %v1512_v46, %v1511_v21 }
 0x260   : > { %v1480_v4 = vmul.f32 %v2448_v27, %v1351_v22  ;;  %v1486_v40 = vmul.f32 %v2454_v23, %v1381_v55  ;;  %v1581_v22 = vsel %vm400_vm0, %v1478_v25, -inf  ;;  %v2458_v55 = vld [vmem:[%s2660_s14 + $0x88] sm:$0xff] }
 0x261   : > { %v1515_v35 = vadd.f32 %v1514_v5, %v1513_v26 }
 0x262   : > { %v1518_v48 = vsel %vm400_vm0, %v1480_v4, 0.0  ;;  %v1530_v18 = vsel %vm400_vm0, %v1486_v40, 0.0 }
 0x263   : > { %v1346_v24 = vpop.permute.xlu1 %1345 }
 0x264   : > { %v3072_v30 = vmul.f32 %v2449_v33, %v1346_v24  ;;  %v1391_v32 = vpop.permute.xlu0 %1390  ;;  %v2459_v24 = vld [vmem:[%s2660_s14 + $0x80] sm:$0xff]  ;;  %v1576_v33 = vsel %vm400_vm0, %v3047_v1, -inf  ;;  %v2462_v1 = vld [vmem:[%s2660_s14 + $0x98] sm:$0xff] }
 0x265   : > { %v1488_v19 = vmul.f32 %v2456_v29, %v1391_v32  ;;  %v2460_v32 = vld [vmem:[%s2660_s14 + $0xa0] sm:$0xff]  ;;  %v1582_v58 = vmax.f32 %v1576_v33, %v1581_v22  ;;  %v1580_v29 = vmax.f32 %v1575_v59, %v1579_v28  ;;  %v2465_v22 = vld [vmem:[%s2660_s14 + $0xb8] sm:$0xff]  ;;  %v2469_v59 = vld [vmem:[%s2660_s14 + $0xd0] sm:$0xff] }
 0x266   : > { %v1516_v37 = vsel %vm400_vm0, %v3072_v30, 0.0  ;;  %v2471_v28 = vld [vmem:[%s2660_s14 + $0xf8] sm:$0xff] }
 0x267   : > { %v1517_v43 = vadd.f32 %v1516_v37, %v1515_v35  ;;  %v1356_v50 = vpop.permute.xlu1 %1355  ;;  %v1534_v11 = vsel %vm400_vm0, %v1488_v19, 0.0  ;;  %v3122_v35 = vmul.f32 %v2460_v32, %v3039_v39  ;;  %v1585_v37 = vsel %vm400_vm0, %v1480_v4, -inf }
 0x268   : > { %v3081_v15 = vmul.f32 %v2451_v51, %v1356_v50 }
 0x269   : > { %v1519_v57 = vadd.f32 %v1518_v48, %v1517_v43  ;;  %v2461_v43 = vld [vmem:[%s2660_s14 + $0xa8] sm:$0xff] }
 0x26a   : > { %v1401_v53 = vpop.permute.xlu0 %1400  ;;  %v1520_v54 = vsel %vm400_vm0, %v3081_v15, 0.0  ;;  %v1494_v50 = vmul.f32 %v2461_v43, %v3044_v8  ;;  %v1544_v8 = vsel %vm400_vm0, %v3122_v35, 0.0  ;;  %v1587_v34 = vsel %vm400_vm0, %v3081_v15, -inf  ;;  %v2467_v43 = vld [vmem:[%s2660_s14 + $0xc8] sm:$0xff] }
 0x26b   : > { %v1521_v7 = vadd.f32 %v1520_v54, %v1519_v57  ;;  %v1490_v26 = vmul.f32 %v2458_v55, %v1401_v53  ;;  %v1578_v57 = vsel %vm400_vm0, %v3059_v3, -inf  ;;  %v1588_v55 = vmax.f32 %v1580_v29, %v1587_v34 }
 0x26c   : > { %v1366_v61 = vpop.permute.xlu1 %1365 }
 0x26d   : > { %v3091_v49 = vmul.f32 %v2453_v63, %v1366_v61  ;;  %v1523_v16 = vadd.f32 %v1522_v56, %v1521_v7  ;;  %v1538_v53 = vsel %vm400_vm0, %v1490_v26, 0.0  ;;  %v2463_v7 = vld [vmem:[%s2660_s14 + $0x90] sm:$0xff]  ;;  %v1586_v61 = vmax.f32 %v1578_v57, %v1585_v37  ;;  %v2466_v37 = vld [vmem:[%s2660_s14 + $0xc0] sm:$0xff] }
 0x26e   : > { %v1589_v63 = vsel %vm400_vm0, %v3077_v0, -inf  ;;  %v1583_v0 = vsel %vm400_vm0, %v3072_v30, -inf  ;;  %v1613_v30 = vsel %vm400_vm0, %v1494_v50, -inf }
 0x26f   : > { %v1524_v62 = vsel %vm400_vm0, %v3091_v49, 0.0 }
 0x270   : > { %v1525_v10 = vadd.f32 %v1524_v62, %v1523_v16  ;;  %v1411_v36 = vpop.permute.xlu0 %1410  ;;  %v1376_v17 = vpop.permute.xlu1 %1375  ;;  %v1546_v16 = vsel %vm400_vm0, %v1494_v50, 0.0  ;;  %v1590_v62 = vmax.f32 %v1582_v58, %v1589_v63 }
 0x271   : > { %v3099_v47 = vmul.f32 %v2455_v12, %v1376_v17  ;;  %v1492_v54 = vmul.f32 %v2462_v1, %v1411_v36  ;;  %v1577_v12 = vsel %vm400_vm0, %v3050_v38, -inf }
 0x272   : > { %v1527_v20 = vadd.f32 %v1526_v9, %v1525_v10  ;;  %v1597_v10 = vsel %vm400_vm0, %v1486_v40, -inf  ;;  %v1593_v9 = vsel %vm400_vm0, %v3088_v45, -inf  ;;  %v2464_v45 = vld [vmem:[%s2660_s14 + $0xb0] sm:$0xff] }
 0x273   : > { %v1528_v6 = vsel %vm400_vm0, %v3099_v47, 0.0  ;;  %v1542_v23 = vsel %vm400_vm0, %v1492_v54, 0.0 }
 0x274   : > { %v1529_v31 = vadd.f32 %v1528_v6, %v1527_v20  ;;  %v3103_v14 = vpop.permute.xlu0 %1430  ;;  %v1386_v13 = vpop.permute.xlu1 %1385  ;;  %v1594_v20 = vmax.f32 %v1586_v61, %v1593_v9  ;;  %v1605_v6 = vsel %vm400_vm0, %v1490_v26, -inf  ;;  %v1609_v26 = vsel %vm400_vm0, %v1492_v54, -inf  ;;  %v2468_v61 = vld [vmem:[%s2660_s14 + $0xd8] sm:$0xff] }
 0x275   : > { %v3108_v42 = vmul.f32 %v2457_v44, %v1386_v13  ;;  %v1601_v13 = vsel %vm400_vm0, %v1488_v19, -inf  ;;  %v1584_v44 = vmax.f32 %v1577_v12, %v1583_v0  ;;  %v1595_v19 = vsel %vm400_vm0, %v3099_v47, -inf  ;;  %v2472_v0 = vld [vmem:[%s2660_s14 + $0xe0] sm:$0xff] }
 0x276   : > { %v1531_v52 = vadd.f32 %v1530_v18, %v1529_v31  ;;  %v1598_v31 = vmax.f32 %v1590_v62, %v1597_v10  ;;  %v1496_v15 = vmul.f32 %v2465_v22, %v3103_v14  ;;  %v1596_v47 = vmax.f32 %v1588_v55, %v1595_v19 }
 0x277   : > { %v1532_v60 = vsel %vm400_vm0, %v3108_v42, 0.0 }
 0x278   : > { %v1533_v2 = vadd.f32 %v1532_v60, %v1531_v52  ;;  %v3112_v46 = vpop.permute.xlu0 %1440  ;;  %v1396_v21 = vpop.permute.xlu1 %1395  ;;  %v1617_v57 = vsel %vm400_vm0, %v1496_v15, -inf }
 0x279   : > { %v1489_v5 = vmul.f32 %v2459_v24, %v1396_v21  ;;  %v1591_v21 = vsel %vm400_vm0, %v3091_v49, -inf  ;;  %v1498_v14 = vmul.f32 %v2467_v43, %v3112_v46 }
 0x27a   : > { %v1535_v27 = vadd.f32 %v1534_v11, %v1533_v2  ;;  %v1606_v2 = vmax.f32 %v1598_v31, %v1605_v6  ;;  %v1602_v11 = vmax.f32 %v1594_v20, %v1601_v13 }
 0x27b   : > { %v1536_v25 = vsel %vm400_vm0, %v1489_v5, 0.0  ;;  %v1603_v33 = vsel %vm400_vm0, %v1489_v5, -inf  ;;  %v1554_v63 = vsel %vm400_vm0, %v1498_v14, 0.0 }
 0x27c   : > { %v1537_v48 = vadd.f32 %v1536_v25, %v1535_v27  ;;  %v1406_v51 = vpop.permute.xlu1 %1405  ;;  %v1451_v4 = vpop.permute.xlu0 %1450  ;;  %v1599_v27 = vsel %vm400_vm0, %v3108_v42, -inf  ;;  %v1592_v25 = vmax.f32 %v1584_v44, %v1591_v21  ;;  %v1550_v42 = vsel %vm400_vm0, %v1496_v15, 0.0 }
 0x27d   : > { %v3133_v39 = vmul.f32 %v2463_v7, %v1406_v51  ;;  %v1610_v51 = vmax.f32 %v1602_v11, %v1609_v26  ;;  %v1614_v5 = vmax.f32 %v1606_v2, %v1613_v30  ;;  %v1604_v1 = vmax.f32 %v1596_v47, %v1603_v33  ;;  %v2473_v2 = vld [vmem:[%s2660_s14 + $0xf0] sm:$0xff] }
 0x27e   : > { %v1539_v56 = vadd.f32 %v1538_v53, %v1537_v48  ;;  %v1611_v48 = vsel %vm400_vm0, %v3122_v35, -inf  ;;  %v1600_v53 = vmax.f32 %v1592_v25, %v1599_v27  ;;  %v1500_v46 = vmul.f32 %v2468_v61, %v1451_v4  ;;  %v1645_v61 = vld [vmem:[%s3280_s5 + $0x8] sm:$0xff] }
 0x27f   : > { %v1540_v3 = vsel %vm400_vm0, %v3133_v39, 0.0  ;;  %v1612_v20 = vmax.f32 %v1604_v1, %v1611_v48 }
 0x280   : > { %v1541_v36 = vadd.f32 %v1540_v3, %v1539_v56  ;;  %v1426_v17 = vpop.permute.xlu1 %1425  ;;  %v1461_v52 = vpop.permute.xlu0 %1460  ;;  %v1607_v56 = vsel %vm400_vm0, %v3133_v39, -inf  ;;  %v1621_v3 = vsel %vm400_vm0, %v1498_v14, -inf }
 0x281   : > { %v1495_v18 = vmul.f32 %v2464_v45, %v1426_v17  ;;  %v1608_v12 = vmax.f32 %v1600_v53, %v1607_v56  ;;  %v1622_v45 = vmax.f32 %v1614_v5, %v1621_v3 }
 0x282   : > { %v1543_v40 = vadd.f32 %v1542_v23, %v1541_v36  ;;  %v1618_v23 = vmax.f32 %v1610_v51, %v1617_v57 }
 0x283   : > { %v1548_v32 = vsel %vm400_vm0, %v1495_v18, 0.0  ;;  %v1615_v17 = vsel %vm400_vm0, %v1495_v18, -inf }
 0x284   : > { %v1545_v38 = vadd.f32 %v1544_v8, %v1543_v40  ;;  %v1436_v60 = vpop.permute.xlu1 %1435  ;;  %v1471_v54 = vpop.permute.xlu0 %1470  ;;  %v1625_v40 = vsel %vm400_vm0, %v1500_v46, -inf  ;;  %v1616_v18 = vmax.f32 %v1608_v12, %v1615_v17  ;;  %v1794_v17 = vld [vmem:[%s3282_s7] sm:$0x1] }
 0x285   : > { %v1497_v49 = vmul.f32 %v2466_v37, %v1436_v60  ;;  %v1504_v9 = vmul.f32 %v2471_v28, %v1471_v54  ;;  %v1626_v19 = vmax.f32 %v1618_v23, %v1625_v40 }
 0x286   : > { %v1547_v24 = vadd.f32 %v1546_v16, %v1545_v38  ;;  %v2470_v16 = vld [vmem:[%s2660_s14 + $0xe8] sm:$0xff] }
 0x287   : > { %v1552_v35 = vsel %vm400_vm0, %v1497_v49, 0.0  ;;  %v1502_v62 = vmul.f32 %v2470_v16, %v1461_v52  ;;  %v1619_v4 = vsel %vm400_vm0, %v1497_v49, -inf  ;;  %v1558_v52 = vsel %vm400_vm0, %v1500_v46, 0.0  ;;  %v1803_v16 = vld [vmem:[%s3283_s8] sm:$0xff] }
 0x288   : > { %v1549_v50 = vadd.f32 %v1548_v32, %v1547_v24  ;;  %v1446_v58 = vpop.permute.xlu1 %1445  ;;  %v1620_v30 = vmax.f32 %v1612_v20, %v1619_v4  ;;  %v1633_v60 = vsel %vm400_vm0, %v1504_v9, -inf }
 0x289   : > { %v1499_v8 = vmul.f32 %v2469_v59, %v1446_v58  ;;  %v1629_v38 = vsel %vm400_vm0, %v1502_v62, -inf  ;;  %v1634_v27 = vmax.f32 %v1626_v19, %v1633_v60  ;;  %v1562_v37 = vsel %vm400_vm0, %v1502_v62, 0.0 }
 0x28a   : > { %v1551_v7 = vadd.f32 %v1550_v42, %v1549_v50  ;;  %v1630_v24 = vmax.f32 %v1622_v45, %v1629_v38  ;;  %v1566_v58 = vsel %vm400_vm0, %v1504_v9, 0.0 }
 0x28b   : > { %v1556_v31 = vsel %vm400_vm0, %v1499_v8, 0.0  ;;  %v1623_v13 = vsel %vm400_vm0, %v1499_v8, -inf }
 0x28c   : > { %v1553_v10 = vadd.f32 %v1552_v35, %v1551_v7  ;;  %v1456_v36 = vpop.permute.xlu1 %1455  ;;  %v1624_v22 = vmax.f32 %v1616_v18, %v1623_v13  ;;  %v1644_v7 = vld [vmem:[%s3280_s5] sm:$0xff] }
 0x28d   : > { %v1501_v39 = vmul.f32 %v2472_v0, %v1456_v36  ;;  %v2129_v35 = vpack.c.bf16 %v1645_v61, %v1644_v7 }
 0x28e   : > { %v1555_v6 = vadd.f32 %v1554_v63, %v1553_v10 }
 0x28f   : > { %v1627_v34 = vsel %vm400_vm0, %v1501_v39, -inf  ;;  %v1560_v55 = vsel %vm400_vm0, %v1501_v39, 0.0 }
 0x290   : > { %v1557_v29 = vadd.f32 %v1556_v31, %v1555_v6  ;;  %v1466_v44 = vpop.permute.xlu1 %1465  ;;  %v1628_v11 = vmax.f32 %v1620_v30, %v1627_v34  ;;  %v1804_v6 = vld [vmem:[%s3284_s9] sm:$0x1] }
 0x291   : > { %v1503_v21 = vmul.f32 %v2473_v2, %v1466_v44 }
 0x292   : > { %v1559_v15 = vadd.f32 %v1558_v52, %v1557_v29  ;;  %v1635_v49 = vmax.f32 %v1628_v11, %v1630_v24 }
 0x293   : > { %v1631_v26 = vsel %vm400_vm0, %v1503_v21, -inf  ;;  %v1564_v43 = vsel %vm400_vm0, %v1503_v21, 0.0 }
 0x294   : > { %v1561_v33 = vadd.f32 %v1560_v55, %v1559_v15  ;;  %v1632_v32 = vmax.f32 %v1624_v22, %v1631_v26 }
 0x296   : > { %v1563_v25 = vadd.f32 %v1562_v37, %v1561_v33  ;;  %v1636_v47 = vmax.f32 %v1632_v32, %v1634_v27 }
 0x298   : > { %v1565_v14 = vadd.f32 %v1564_v43, %v1563_v25  ;;  %v1637_v50 = vmax.f32 %v1635_v49, %v1636_v47 }
 0x29a   : > { %v1567_v48 = vadd.f32 %v1566_v58, %v1565_v14  ;;  %v1638_v51 = vrot.slane %v1637_v50, 4 }
 0x29c   : > { %v1568_v42 = vrot.slane %v1567_v48, 4  ;;  %v1639_v5 = vmax.f32 %v1637_v50, %v1638_v51 }
 0x29e   : > { %v1569_v57 = vadd.f32 %v1568_v42, %v1567_v48  ;;  %v1640_v53 = vrot.slane %v1639_v5, 2 }
 0x2a0   : > { %v1570_v1 = vrot.slane %v1569_v57, 2  ;;  %v1641_v54 = vmax.f32 %v1639_v5, %v1640_v53 }
 0x2a2   : > { %v1571_v46 = vadd.f32 %v1570_v1, %v1569_v57  ;;  %v1642_v56 = vrot.slane %v1641_v54, 1 }
 0x2a4   : > { %v1572_v59 = vrot.slane %v1571_v46, 1  ;;  %v1643_v8 = vmax.f32 %v1641_v54, %v1642_v56 }
 0x2a6   : > { %v1573_v63 = vadd.f32 %v1572_v59, %v1571_v46  ;;  %2107 = vmatmul.mubr.msk.f32.vlgmr.msra.gmra.mrb[12].mxu1 %vm400_vm0, %v1643_v8 }
 0x2a7   : > { %2130 = vmatpush3.bf16.msra.mxu1 %v2129_v35  ;;  %2113 = vmatprep.mubr.msk.f32.mxu1 %vm2540_vm2, %v2541_v41 }
 0x2a8   : > { %v1574_v3 = vmul.f32 0.00390625, %v1573_v63  ;;  %2116 = vmatprep.subr.mxu1 %v2541_v41 }
 0x2aa   : > { %2114 = vmatmul.mubr.msk.f32.vlgmr.msra.gmra.mrb[14].mxu1 %vm400_vm0, %v1574_v3 }
 0x2ab   : > { %2118 = vmatprep.mubr.msk.f32.mxu1 %vm2540_vm2, %v2541_v41  ;;  %2117 = vmatpush3.msra.mxu1 %v1803_v16 }
 0x379   : > { %v1717_v62 = vpop.f32.mrb[12].mxu1 }
 0x37a   : > { %v2108_v10 = vpop.f32.mrb[13].mxu1 }
 0x37d   : > { %v1790_v36 = vpop.f32.mrb[14].mxu1 }
 0x37e   : > { %v1791_v28 = vadd.f32 %v1790_v36, %v1717_v62  ;;  %v2115_v9 = vpop.f32.mrb[15].mxu1 }
 0x380   : > { %v1795_v4 = vadd.f32 %v1794_v17, %v1791_v28 }
 0x382   : > { %v1796_v0 = vsub.f32 0.0, %v1795_v4 }
 0x384   : > { %v1797_v39 = vmul.f32 1.442695, %v1796_v0 }
 0x386   : > { %2434 = vpow2.f32 %v1797_v39 }
 0x390   : > { %v2435_v23 = vpop.eup %2434 }
 0x391   : > { %v1799_v41 = vadd.f32 1.0, %v2435_v23 }
 0x393   : > { %2436 = vrcp.f32 %v1799_v41 }
 0x39d   : > { %v2437_v12 = vpop.eup %2436 }
 0x39e   : > { %v1802_v20 = vmul.f32 %v2437_v12, %v1795_v4 }
 0x3a0   : > { %2119 = vmatmul.mubr.msk.f32.vlgmr.msra.gmra.mrb[16].mxu1 %vm1805_vm3, %v1802_v20 }
 0x473   : > { %v1875_v40 = vpop.f32.mrb[16].mxu1 }
 0x474   : > { %v1876_v31 = vadd.f32 %v1875_v40, %v1804_v6  ;;  %v2120_v13 = vpop.f32.mrb[17].mxu1 }
 0x476   : > { %v1880_v34 = vsel %vm1879_vm4, %v1876_v31, -inf }
 0x477   : > { %1881 = vmax.xlane.f32.xlu1 %v1880_v34 }
 0x504   : > { %v1882_v45 = vpop.xlane.xlu1 %1881 }
 0x505   : > { %v1883_v18 = vsub.f32 %v1876_v31, %v1882_v45 }
 0x507   : > { %v1884_v30 = vmul.f32 1.442695, %v1883_v18 }
 0x509   : > { %2438 = vpow2.f32 %v1884_v30 }
 0x513   : > { %v2439_v29 = vpop.eup %2438 }
 0x514   : > { %v1886_v44 = vsel %vm1879_vm4, %v2439_v29, 0.0 }
 0x515   : > { %1887 = vadd.xlane.f32.xlu0 %v1886_v44 }
 0x5a2   : > { %v1888_v52 = vpop.xlane.xlu0 %1887 }
 0x5a3   : > { %2440 = vrcp.f32 %v1888_v52 }
 0x5ad   : > { %v2441_v38 = vpop.eup %2440 }
 0x5ae   : > { %v1890_v60 = vmul.f32 %v2441_v38, %v2439_v29 }
 0x5b0   : > { %1891 = vst.msk [vmem:[%s353_s11] sm:$0x1] %vm1879_vm4, %v1890_v60 }
 0x5b1   : > { %2487 = shalt.err (!%p2484_p3)
}
 0x5b2   : > { %s2488_s28 = scalar_lea.hbm %s3232_s19, 16  ;;  %s2492_s11 = scalar_lea.hbm %s3285_s10, 32 }
 0x5b3   : > { %p2489_p4 = scmp.ne.s32.totalorder %s3232_s19, %s2488_s28  ;;  %p2493_p9 = scmp.lt.u32.totalorder %s3232_s19, %s3285_s10 }
 0x5b4   : > { %p2494_p10 = scmp.lt.u32.totalorder %s2492_s11, %s2488_s28  ;;  %p2496_p12 = scmp.lt.u32.totalorder %s2488_s28, %s3232_s19 }
 0x5b5   : > { %p2490_p7 = pnand %p2489_p4, %p2639_p5 }
 0x5b6   : > { %p2495_p11 = por %p2494_p10, %p2493_p9 }
 0x5b7   : > { %p2491_p8 = pneg %p2490_p7 }
 0x5b8   : > { %p2497_p13 = por %p2496_p12, %p2495_p11 }
 0x5ba   : > { %p2498_p0 = pnand %p2497_p13, %p2491_p8 }
 0x5bc   : > { %2501 = shalt.err (!%p2498_p0)
}
 0x5bd   : > { %2133 = dma.vmem_to_hbm [thread:$0]  (%p2639_p5), %s3234_s12, 16, %s3232_s19, %s1893_s21  }
 0x5be PF: > { %p2139_p1 = scmp.ge.s32.totalorder %s2536_s18, 2  ;;  %s1917_s22 = sand.u32 1, %s2524_s15  }
 0x5bf   : > { %s1918_s4 = scalar_lea.sflag [#allocation4], %s1917_s22 }
 0x5c0   : > { %p2136_p2 = pnand %p2139_p1, %p2643_p6 }
 0x5c2   : > { %2519 = dma.done.wait (!%p2136_p2), %s1918_s4, 16  }
 0x5c3   : > { %2521 = vsyncadd (!%p2136_p2), %s1918_s4, 4294967280  ;;  %p22_p3 = scmp.ge.s32.totalorder %s2626_s20, 4   ;;  %s3288_s15 = smov %s2528_s16 }
 0x5c4   : > { %s3289_s16 = smov %s2532_s17  ;;  %s3290_s17 = smov %s2637_s23 }
 0x5c5   : > { %s3291_s18 = smov %s2626_s20  ;;  %24 = sbr.rel (!%p22_p3) target bundleno = 6 (0x6), region = 95 }
 0x5cc   :  { %1922 = vsyncpa [#allocation4], 1 }
 0x5cd   :  { %1924 = vsyncpa [#allocation4 + $0x1], 1 }

</bundles_post_ra>
